<compile_context>
chip_gen: v7x
topology: tpu7x:2x2x1
jax: 0.10.0
libtpu: 0.0.40
codegen_flags: <defaults>
</compile_context>

<pallas_src>
import math

import jax
import jax.numpy as jnp
from jax import lax
from jax.experimental import pallas as pl
from jax.experimental.pallas import tpu as pltpu


LANE = 128  # TPU lane width; each GRU gate is padded to a multiple of this.


def _round_up(x, m):
    return (x + m - 1) // m * m


# ------------------------- fused projection + GRU kernel ------------------------- #
def fused_gru_kernel(x_ref, w_in_ref, b_in_ref, w_hh_ref, b_hh_n_ref,
                     out_ref, h_ref, gi_ref):
    """One T-chunk of the recurrence with the (linear encoder + GRU input)
    projection fused in.

      x_ref      : (tileT*B, D)        chunk of flattened inputs (caller dtype)
      w_in_ref   : (D, 3*Mp)           fused W_enc @ W_ih, lane-dense gate slots
      b_in_ref   : (1, 3*Mp)  f32      fused b_enc @ W_ih + b_ih (+ b_hh[r,z])
      w_hh_ref   : (Mp, 3*Mp)          hidden weights, lane-dense gate slots
      b_hh_n_ref : (1, Mp)    f32      n-gate part of b_hh (stays inside r * (.))
      out_ref    : (tileT, B, Mp) f32  hidden states for this chunk
      h_ref      : (B, Mp)    f32      hidden state carried across grid steps
      gi_ref     : (tileT*B, 3*Mp) f32 scratch: this chunk's input projection
    """
    tileT, B, Mp = out_ref.shape

    @pl.when(pl.program_id(0) == 0)
    def _():
        h_ref[...] = jnp.zeros_like(h_ref)   # PyTorch GRU: zero initial hidden

    # Non-recurrent projection for every timestep of the chunk in one MXU pass
    # (tileT*B rows -> good MXU row utilisation; all biases already folded in).
    gi_ref[...] = (jnp.dot(x_ref[...].astype(w_in_ref.dtype), w_in_ref[...],
                           preferred_element_type=jnp.float32)
                   + b_in_ref[...])

    bhn = jnp.broadcast_to(b_hh_n_ref[...], (B, Mp))   # hoisted out of the loop

    def step(t, h):
        gi = gi_ref[pl.ds(t * B, B), :]                                # (B, 3*Mp)
        # Per-step hidden matmul; with tiny B the cost is the weight push — the
        # (Mp, 3*Mp) RHS is grid-/loop-constant so the compiler should hoist it
        # onto the MXU (explicit pltpu.matmul_push_rhs only if the bundle dump
        # shows it re-pushed every step).
        gh = jnp.dot(h.astype(w_hh_ref.dtype), w_hh_ref[...],
                     preferred_element_type=jnp.float32)               # (B, 3*Mp)
        # PyTorch gate order r, z, n; all slices are 128-aligned (Mp % 128 == 0).
        r = jax.nn.sigmoid(gi[:, 0 * Mp:1 * Mp] + gh[:, 0 * Mp:1 * Mp])
        zg = jax.nn.sigmoid(gi[:, 1 * Mp:2 * Mp] + gh[:, 1 * Mp:2 * Mp])
        n = jnp.tanh(gi[:, 2 * Mp:3 * Mp] + r * (gh[:, 2 * Mp:3 * Mp] + bhn))
        h_new = (1.0 - zg) * n + zg * h
        out_ref[t] = h_new.astype(out_ref.dtype)
        return h_new

    # Modest unroll: LLO scheduling visibility without blowing up vreg live
    # ranges / code size at realistic tileT (review: do NOT fully unroll over T).
    h_ref[...] = lax.fori_loop(0, tileT, step, h_ref[...],
                               unroll=max(1, min(4, tileT)))


# ------------------------------ chunk-size heuristic ----------------------------- #
def _pick_t_chunk(B, D, Mp, x_itemsize, w_itemsize, step,
                  vmem_budget_bytes=20 * 1024 * 1024):
    """Pick tileT: ~512 projection rows per chunk (near HBM roofline per the
    measured tile-size sweep), tileT*B a multiple of the sublane packing, and the
    double-buffered x/out blocks + gi scratch + (double-buffered) weights under
    `vmem_budget_bytes` — safe under the 32 MiB default scoped VMEM everywhere,
    including v7x.  On v5e/v6e (128 MiB physical) the budget can be raised."""
    G = 3 * Mp
    target = _round_up(-(-512 // B), step)                        # ~512 MXU rows
    const_bytes = 2 * (D * G + G + Mp * G + Mp) * w_itemsize      # dbl-buffered
    per_t = B * (2 * D * x_itemsize + 2 * Mp * 4 + G * 4)         # x+out(dbl)+gi
    avail = vmem_budget_bytes - const_bytes
    fit = max(step, (avail // per_t) // step * step) if avail > per_t else step
    return int(max(step, min(target, fit)))


# --------------------------- parameter preparation ------------------------------ #
def prepare_params(params, *, matmul_dtype=jnp.float32):
    """One-time fusion + lane-dense padding of the module parameters."""
    w_enc_t = params["w_enc_t"].astype(jnp.float32)   # (D, N)
    b_enc = params["b_enc"].astype(jnp.float32)       # (1, N)
    w_ih_t = params["w_ih_t"].astype(jnp.float32)     # (N, 3M)
    w_hh_t = params["w_hh_t"].astype(jnp.float32)     # (M, 3M)
    b_ih = params["b_ih"].astype(jnp.float32)         # (1, 3M)
    b_hh = params["b_hh"].astype(jnp.float32)         # (1, 3M)

    M = w_hh_t.shape[0]
    Mp = _round_up(M, LANE)
    G = 3 * Mp

    # Fuse encoder into the GRU input projection (both linear, z never returned):
    #   gi = (x @ W_enc + b_enc) @ W_ih + b_ih = x @ (W_enc @ W_ih) + (b_enc @ W_ih + b_ih)
    w_in = w_enc_t @ w_ih_t                       # (D, 3M)
    b_in = b_enc @ w_ih_t + b_ih                  # (1, 3M)
    # Fold b_hh for the r and z gates into the hoisted bias (n gate keeps its b_hh
    # inside the recurrence because of the r * (gh_n + b_hh_n) term).
    b_in = b_in.at[:, :2 * M].add(b_hh[:, :2 * M])

    def pad_gates(a, rows_pad=None):
        # (R, 3M) -> (rows_pad or R, 3*Mp), each gate in its own lane-aligned slot.
        R = a.shape[0]
        Rp = rows_pad if rows_pad is not None else R
        out = jnp.zeros((Rp, G), jnp.float32)
        for g in range(3):
            out = out.at[:R, g * Mp:g * Mp + M].set(a[:, g * M:(g + 1) * M])
        return out

    # Note (v6e/v7x): if Mp > 128 and the projection becomes MXU-bound, padding
    # 3*Mp up to a multiple of 256 maps better onto the 256-wide MXU.
    return {
        "w_in": pad_gates(w_in).astype(matmul_dtype),                  # (D, 3*Mp)
        "b_in": pad_gates(b_in),                                       # (1, 3*Mp) f32
        "w_hh": pad_gates(w_hh_t, rows_pad=Mp).astype(matmul_dtype),   # (Mp, 3*Mp)
        "b_hh_n": jnp.zeros((1, Mp), jnp.float32).at[:, :M].set(b_hh[:, 2 * M:3 * M]),
        "M": M,
        "Mp": Mp,
    }


# ------------------------------------ forward ------------------------------------ #
def sampling_world_model_forward(x, prep, *, t_chunk=None):
    """x: (T, B, C, W, H) -> (T*B, M), matching the PyTorch module's forward.
    The module's max_seq_size chunking is a memory optimisation only; the chunked
    grid here (with the hidden state carried across chunks) is mathematically
    identical."""
    T, B, C, W, H = x.shape
    D = C * W * H
    M, Mp = prep["M"], prep["Mp"]
    G = 3 * Mp

    x_itemsize = jnp.dtype(x.dtype).itemsize
    w_itemsize = jnp.dtype(prep["w_in"].dtype).itemsize
    sub = max(8, 32 // x_itemsize)               # sublane packing of the x block
    step = sub // math.gcd(B, sub)               # smallest tileT with tileT*B % sub == 0

    if t_chunk is None:
        tileT = _pick_t_chunk(B, D, Mp, x_itemsize, w_itemsize, step)
    else:
        tileT = _round_up(max(1, t_chunk), step)
    tileT = min(tileT, _round_up(T, step))
    Tp = _round_up(T, tileT)

    x3 = x.reshape(T, B, D)
    if Tp != T:
        # Zero-pad the tail chunk: padded timesteps run after every real output
        # and their rows are sliced away below, so they cannot affect the result.
        x3 = jnp.pad(x3, ((0, Tp - T), (0, 0), (0, 0)))
    x2d = x3.reshape(Tp * B, D)                  # row = t*B + b -> chunks contiguous

    out_pad = pl.pallas_call(
        fused_gru_kernel,
        out_shape=jax.ShapeDtypeStruct((Tp, B, Mp), jnp.float32),
        grid_spec=pltpu.PrefetchScalarGridSpec(
            num_scalar_prefetch=0,
            grid=(Tp // tileT,),                 # sequential walk over T-chunks
            in_specs=[
                pl.BlockSpec((tileT * B, D), lambda c: (c, 0)),   # x chunk
                # Grid-constant operands (could be single-buffered with
                # pipeline_mode=pl.Buffered(1) to reclaim VMEM for larger chunks).
                pl.BlockSpec((D, G), lambda c: (0, 0)),           # W_in
                pl.BlockSpec((1, G), lambda c: (0, 0)),           # b_in (fused)
                pl.BlockSpec((Mp, G), lambda c: (0, 0)),          # W_hh
                pl.BlockSpec((1, Mp), lambda c: (0, 0)),          # b_hh (n gate)
            ],
            out_specs=pl.BlockSpec((tileT, B, Mp), lambda c: (c, 0, 0)),
            scratch_shapes=[
                pltpu.VMEM((B, Mp), jnp.float32),           # carried hidden state
                pltpu.VMEM((tileT * B, G), jnp.float32),    # chunk input projection
            ],
        ),
        compiler_params=pltpu.CompilerParams(
            # The recurrence is sequential in T -> "arbitrary".  A second,
            # "parallel" batch-chunk axis would let v7x's 2nd TensorCore run half
            # the batch's recurrence; omitted here (demo B=2) to keep the x block
            # 2-D and reshape-free.
            dimension_semantics=("arbitrary",),
            vmem_limit_bytes=32 * 1024 * 1024,
        ),
    )(x2d, prep["w_in"], prep["b_in"], prep["w_hh"], prep["b_hh_n"])

    return out_pad[:T, :, :M].reshape(T * B, M)


# ------------------------------- pure-JAX reference ------------------------------ #
def reference_forward(x, params):
    T, B, C, W, H = x.shape
    D = C * W * H
    z = (x.reshape(T * B, D) @ params["w_enc_t"] + params["b_enc"][0]).reshape(T, B, -1)
    M = params["w_hh_t"].shape[0]

    def step(h, x_t):
        gi = x_t @ params["w_ih_t"] + params["b_ih"][0]
        gh = h @ params["w_hh_t"] + params["b_hh"][0]
        r = jax.nn.sigmoid(gi[:, :M] + gh[:, :M])
        zg = jax.nn.sigmoid(gi[:, M:2 * M] + gh[:, M:2 * M])
        n = jnp.tanh(gi[:, 2 * M:] + r * gh[:, 2 * M:])
        h_new = (1.0 - zg) * n + zg * h
        return h_new, h_new

    h0 = jnp.zeros((B, M), jnp.float32)
    _, outs = lax.scan(step, h0, z)
    return outs.reshape(T * B, M)


# -------------------------------------- main -------------------------------------- #
if __name__ == "__main__":
    # Small shapes consistent with the module's forward.
    T, B, C, W, H = 8, 2, 4, 16, 16
    N, M = 32, 16
    D = C * W * H

    key = jax.random.PRNGKey(0)
    ks = jax.random.split(key, 8)

    x = jax.random.normal(ks[0], (T, B, C, W, H), jnp.float32)

    # Deterministic parameter init (uniform, PyTorch-like scales).
    # TODO(synk): the module's `encoder` is arbitrary; per linear_phi_eval.py we
    # assume a linear "phi" (Linear(D -> N)).  A conv encoder needs its own kernel.
    s_enc = 1.0 / jnp.sqrt(D)
    s_gru = 1.0 / jnp.sqrt(M)
    params = {
        "w_enc_t": jax.random.uniform(ks[1], (D, N), jnp.float32, -s_enc, s_enc),
        "b_enc": jax.random.uniform(ks[2], (1, N), jnp.float32, -s_enc, s_enc),
        "w_ih_t": jax.random.uniform(ks[3], (N, 3 * M), jnp.float32, -s_gru, s_gru),
        "w_hh_t": jax.random.uniform(ks[4], (M, 3 * M), jnp.float32, -s_gru, s_gru),
        "b_ih": jax.random.uniform(ks[5], (1, 3 * M), jnp.float32, -s_gru, s_gru),
        "b_hh": jax.random.uniform(ks[6], (1, 3 * M), jnp.float32, -s_gru, s_gru),
    }

    ref = reference_forward(x, params)

    # 1) f32 path, forced t_chunk=4 -> 2 grid steps: exercises the carried-h scratch.
    prep_f32 = prepare_params(params, matmul_dtype=jnp.float32)
    out_f32 = jax.block_until_ready(sampling_world_model_forward(x, prep_f32, t_chunk=4))
    assert out_f32.shape == (T * B, M)
    assert jnp.allclose(out_f32, ref, atol=2e-4, rtol=2e-4), "f32 mismatch vs reference"

    # 2) Ragged T (T % t_chunk != 0): exercises the zero-padded tail chunk.
    T2 = 5
    x2 = jax.random.normal(ks[7], (T2, B, C, W, H), jnp.float32)
    ref2 = reference_forward(x2, params)
    out2 = jax.block_until_ready(sampling_world_model_forward(x2, prep_f32, t_chunk=4))
    assert out2.shape == (T2 * B, M)
    assert jnp.allclose(out2, ref2, atol=2e-4, rtol=2e-4), "ragged-T mismatch vs reference"

    # 3) bf16 MXU operands + bf16 activations (f32 accumulation, f32 gate math),
    #    auto-chosen chunking: looser numerical check.
    prep_bf16 = prepare_params(params, matmul_dtype=jnp.bfloat16)
    out_bf16 = jax.block_until_ready(
        sampling_world_model_forward(x.astype(jnp.bfloat16), prep_bf16))
    assert out_bf16.shape == (T * B, M)
    assert jnp.allclose(out_bf16, ref, atol=5e-2, rtol=5e-2), "bf16 mismatch vs reference"

    print("KERNEL_OK")
</pallas_src>

<mosaic_0001>
module attributes {stable_mosaic.version = 11 : i64} {
  func.func @fused_gru_kernel(%arg0: i32, %arg1: memref<8x1024xf32, #tpu.memory_space<vmem>>, %arg2: memref<1024x384xf32, #tpu.memory_space<vmem>>, %arg3: memref<1x384xf32, #tpu.memory_space<vmem>>, %arg4: memref<128x384xf32, #tpu.memory_space<vmem>>, %arg5: memref<1x128xf32, #tpu.memory_space<vmem>>, %arg6: memref<4x2x128xf32, #tpu.memory_space<vmem>>, %arg7: memref<2x128xf32, #tpu.memory_space<vmem>>, %arg8: memref<8x384xf32, #tpu.memory_space<vmem>>) attributes {dimension_semantics = [#tpu.dimension_semantics<arbitrary>], iteration_bounds = array<i64: 2>, scalar_prefetch = 0 : i64, scratch_operands = 2 : i64, tpu.core_type = #tpu.core_type<tc>, window_params = [{transform_indices = @transform_0, window_bounds = array<i64: 8, 1024>}, {pipeline_mode = #tpu.pipeline_mode<synchronous>, transform_indices = @transform_1, window_bounds = array<i64: 1024, 384>}, {pipeline_mode = #tpu.pipeline_mode<synchronous>, transform_indices = @transform_2, window_bounds = array<i64: 1, 384>}, {pipeline_mode = #tpu.pipeline_mode<synchronous>, transform_indices = @transform_3, window_bounds = array<i64: 128, 384>}, {pipeline_mode = #tpu.pipeline_mode<synchronous>, transform_indices = @transform_4, window_bounds = array<i64: 1, 128>}, {transform_indices = @transform_5, window_bounds = array<i64: 4, 2, 128>}]} {
    %c0_i32 = arith.constant 0 : i32
    %0 = arith.cmpi eq, %arg0, %c0_i32 : i32
    %1 = arith.extui %0 : i1 to i32
    %c0_i32_0 = arith.constant 0 : i32
    %2 = arith.cmpi ne, %1, %c0_i32_0 : i32
    scf.if %2 {
      %cst_55 = arith.constant 0.000000e+00 : f32
      %159 = vector.broadcast %cst_55 : f32 to vector<2x128xf32>
      %c0_56 = arith.constant 0 : index
      %c0_57 = arith.constant 0 : index
      %160 = vector.load %arg7[%c0_56, %c0_57] : memref<2x128xf32, #tpu.memory_space<vmem>>, vector<2x128xf32>
      tpu.vector_store %arg7[%c0_56, %c0_57], %159 {strides = array<i32>} : memref<2x128xf32, #tpu.memory_space<vmem>>, vector<2x128xf32>,
    } else {
    }
    %c0 = arith.constant 0 : index
    %c0_1 = arith.constant 0 : index
    %3 = vector.load %arg1[%c0, %c0_1] : memref<8x1024xf32, #tpu.memory_space<vmem>>, vector<8x1024xf32>
    %c0_2 = arith.constant 0 : index
    %c0_3 = arith.constant 0 : index
    %4 = vector.load %arg2[%c0_2, %c0_3] : memref<1024x384xf32, #tpu.memory_space<vmem>>, vector<1024x384xf32>
    %cst = arith.constant dense<0.000000e+00> : vector<8x384xf32>
    %5 = tpu.matmul %3, %4, %cst {dimension_numbers = #tpu.dot_dimension_numbers<[1], [0], [0], [1], [0, 0, 1, 1], [], []>} : vector<8x1024xf32>, vector<1024x384xf32>, vector<8x384xf32> -> vector<8x384xf32>
    %c0_4 = arith.constant 0 : index
    %c0_5 = arith.constant 0 : index
    %6 = vector.load %arg3[%c0_4, %c0_5] : memref<1x384xf32, #tpu.memory_space<vmem>>, vector<1x384xf32>
    %7 = vector.broadcast %6 : vector<1x384xf32> to vector<8x384xf32>
    %8 = arith.addf %5, %7 : vector<8x384xf32>
    %c0_6 = arith.constant 0 : index
    %c0_7 = arith.constant 0 : index
    %9 = vector.load %arg8[%c0_6, %c0_7] : memref<8x384xf32, #tpu.memory_space<vmem>>, vector<8x384xf32>
    tpu.vector_store %arg8[%c0_6, %c0_7], %8 {strides = array<i32>} : memref<8x384xf32, #tpu.memory_space<vmem>>, vector<8x384xf32>,
    %c0_8 = arith.constant 0 : index
    %c0_9 = arith.constant 0 : index
    %10 = vector.load %arg5[%c0_8, %c0_9] : memref<1x128xf32, #tpu.memory_space<vmem>>, vector<1x128xf32>
    %11 = vector.shape_cast %10 : vector<1x128xf32> to vector<1x128xf32>
    %12 = vector.broadcast %11 : vector<1x128xf32> to vector<2x128xf32>
    %c0_10 = arith.constant 0 : index
    %c0_11 = arith.constant 0 : index
    %13 = vector.load %arg7[%c0_10, %c0_11] : memref<2x128xf32, #tpu.memory_space<vmem>>, vector<2x128xf32>
    %c0_i32_12 = arith.constant 0 : i32
    %c2_i32 = arith.constant 2 : i32
    %14 = arith.muli %c0_i32_12, %c2_i32 : i32
    %15 = arith.index_cast %14 : i32 to index
    %c0_13 = arith.constant 0 : index
    %16 = vector.load %arg8[%15, %c0_13] : memref<8x384xf32, #tpu.memory_space<vmem>>, vector<2x384xf32>
    %c0_14 = arith.constant 0 : index
    %c0_15 = arith.constant 0 : index
    %17 = vector.load %arg4[%c0_14, %c0_15] : memref<128x384xf32, #tpu.memory_space<vmem>>, vector<128x384xf32>
    %cst_16 = arith.constant dense<0.000000e+00> : vector<2x384xf32>
    %18 = tpu.matmul %13, %17, %cst_16 {dimension_numbers = #tpu.dot_dimension_numbers<[1], [0], [0], [1], [0, 0, 1, 1], [], []>} : vector<2x128xf32>, vector<128x384xf32>, vector<2x384xf32> -> vector<2x384xf32>
    %19 = vector.extract_strided_slice %16 {offsets = [0, 0], sizes = [2, 128], strides = [1, 1]} : vector<2x384xf32> to vector<2x128xf32>
    %20 = vector.extract_strided_slice %18 {offsets = [0, 0], sizes = [2, 128], strides = [1, 1]} : vector<2x384xf32> to vector<2x128xf32>
    %21 = arith.addf %19, %20 : vector<2x128xf32>
    %22 = arith.negf %21 : vector<2x128xf32>
    %23 = math.exp %22 : vector<2x128xf32>
    %cst_17 = arith.constant 1.000000e+00 : f32
    %24 = vector.broadcast %cst_17 : f32 to vector<2x128xf32>
    %25 = arith.addf %24, %23 : vector<2x128xf32>
    %26 = arith.divf %24, %25 : vector<2x128xf32>
    %27 = vector.extract_strided_slice %16 {offsets = [0, 128], sizes = [2, 128], strides = [1, 1]} : vector<2x384xf32> to vector<2x128xf32>
    %28 = vector.extract_strided_slice %18 {offsets = [0, 128], sizes = [2, 128], strides = [1, 1]} : vector<2x384xf32> to vector<2x128xf32>
    %29 = arith.addf %27, %28 : vector<2x128xf32>
    %30 = arith.negf %29 : vector<2x128xf32>
    %31 = math.exp %30 : vector<2x128xf32>
    %cst_18 = arith.constant 1.000000e+00 : f32
    %32 = vector.broadcast %cst_18 : f32 to vector<2x128xf32>
    %33 = arith.addf %32, %31 : vector<2x128xf32>
    %34 = arith.divf %32, %33 : vector<2x128xf32>
    %35 = vector.extract_strided_slice %16 {offsets = [0, 256], sizes = [2, 128], strides = [1, 1]} : vector<2x384xf32> to vector<2x128xf32>
    %36 = vector.extract_strided_slice %18 {offsets = [0, 256], sizes = [2, 128], strides = [1, 1]} : vector<2x384xf32> to vector<2x128xf32>
    %37 = arith.addf %36, %12 : vector<2x128xf32>
    %38 = arith.mulf %26, %37 : vector<2x128xf32>
    %39 = arith.addf %35, %38 : vector<2x128xf32>
    %40 = math.tanh %39 : vector<2x128xf32>
    %cst_19 = arith.constant 1.000000e+00 : f32
    %41 = vector.broadcast %cst_19 : f32 to vector<2x128xf32>
    %42 = arith.subf %41, %34 : vector<2x128xf32>
    %43 = arith.mulf %42, %40 : vector<2x128xf32>
    %44 = arith.mulf %34, %13 : vector<2x128xf32>
    %45 = arith.addf %43, %44 : vector<2x128xf32>
    %46 = arith.index_cast %c0_i32_12 : i32 to index
    %c0_20 = arith.constant 0 : index
    %c0_21 = arith.constant 0 : index
    %47 = vector.load %arg6[%46, %c0_20, %c0_21] : memref<4x2x128xf32, #tpu.memory_space<vmem>>, vector<1x2x128xf32>
    %48 = vector.shape_cast %47 : vector<1x2x128xf32> to vector<2x128xf32>
    %49 = vector.shape_cast %45 : vector<2x128xf32> to vector<1x2x128xf32>
    tpu.vector_store %arg6[%46, %c0_20, %c0_21], %49 {strides = array<i32>} : memref<4x2x128xf32, #tpu.memory_space<vmem>>, vector<1x2x128xf32>,
    %c1_i32 = arith.constant 1 : i32
    %c2_i32_22 = arith.constant 2 : i32
    %50 = arith.muli %c1_i32, %c2_i32_22 : i32
    %51 = arith.index_cast %50 : i32 to index
    %c0_23 = arith.constant 0 : index
    %52 = vector.load %arg8[%51, %c0_23] : memref<8x384xf32, #tpu.memory_space<vmem>>, vector<2x384xf32>
    %c0_24 = arith.constant 0 : index
    %c0_25 = arith.constant 0 : index
    %53 = vector.load %arg4[%c0_24, %c0_25] : memref<128x384xf32, #tpu.memory_space<vmem>>, vector<128x384xf32>
    %cst_26 = arith.constant dense<0.000000e+00> : vector<2x384xf32>
    %54 = tpu.matmul %45, %53, %cst_26 {dimension_numbers = #tpu.dot_dimension_numbers<[1], [0], [0], [1], [0, 0, 1, 1], [], []>} : vector<2x128xf32>, vector<128x384xf32>, vector<2x384xf32> -> vector<2x384xf32>
    %55 = vector.extract_strided_slice %52 {offsets = [0, 0], sizes = [2, 128], strides = [1, 1]} : vector<2x384xf32> to vector<2x128xf32>
    %56 = vector.extract_strided_slice %54 {offsets = [0, 0], sizes = [2, 128], strides = [1, 1]} : vector<2x384xf32> to vector<2x128xf32>
    %57 = arith.addf %55, %56 : vector<2x128xf32>
    %58 = arith.negf %57 : vector<2x128xf32>
    %59 = math.exp %58 : vector<2x128xf32>
    %cst_27 = arith.constant 1.000000e+00 : f32
    %60 = vector.broadcast %cst_27 : f32 to vector<2x128xf32>
    %61 = arith.addf %60, %59 : vector<2x128xf32>
    %62 = arith.divf %60, %61 : vector<2x128xf32>
    %63 = vector.extract_strided_slice %52 {offsets = [0, 128], sizes = [2, 128], strides = [1, 1]} : vector<2x384xf32> to vector<2x128xf32>
    %64 = vector.extract_strided_slice %54 {offsets = [0, 128], sizes = [2, 128], strides = [1, 1]} : vector<2x384xf32> to vector<2x128xf32>
    %65 = arith.addf %63, %64 : vector<2x128xf32>
    %66 = arith.negf %65 : vector<2x128xf32>
    %67 = math.exp %66 : vector<2x128xf32>
    %cst_28 = arith.constant 1.000000e+00 : f32
    %68 = vector.broadcast %cst_28 : f32 to vector<2x128xf32>
    %69 = arith.addf %68, %67 : vector<2x128xf32>
    %70 = arith.divf %68, %69 : vector<2x128xf32>
    %71 = vector.extract_strided_slice %52 {offsets = [0, 256], sizes = [2, 128], strides = [1, 1]} : vector<2x384xf32> to vector<2x128xf32>
    %72 = vector.extract_strided_slice %54 {offsets = [0, 256], sizes = [2, 128], strides = [1, 1]} : vector<2x384xf32> to vector<2x128xf32>
    %73 = arith.addf %72, %12 : vector<2x128xf32>
    %74 = arith.mulf %62, %73 : vector<2x128xf32>
    %75 = arith.addf %71, %74 : vector<2x128xf32>
    %76 = math.tanh %75 : vector<2x128xf32>
    %cst_29 = arith.constant 1.000000e+00 : f32
    %77 = vector.broadcast %cst_29 : f32 to vector<2x128xf32>
    %78 = arith.subf %77, %70 : vector<2x128xf32>
    %79 = arith.mulf %78, %76 : vector<2x128xf32>
    %80 = arith.mulf %70, %45 : vector<2x128xf32>
    %81 = arith.addf %79, %80 : vector<2x128xf32>
    %82 = arith.index_cast %c1_i32 : i32 to index
    %c0_30 = arith.constant 0 : index
    %c0_31 = arith.constant 0 : index
    %83 = vector.load %arg6[%82, %c0_30, %c0_31] : memref<4x2x128xf32, #tpu.memory_space<vmem>>, vector<1x2x128xf32>
    %84 = vector.shape_cast %83 : vector<1x2x128xf32> to vector<2x128xf32>
    %85 = vector.shape_cast %81 : vector<2x128xf32> to vector<1x2x128xf32>
    tpu.vector_store %arg6[%82, %c0_30, %c0_31], %85 {strides = array<i32>} : memref<4x2x128xf32, #tpu.memory_space<vmem>>, vector<1x2x128xf32>,
    %c2_i32_32 = arith.constant 2 : i32
    %c2_i32_33 = arith.constant 2 : i32
    %86 = arith.muli %c2_i32_32, %c2_i32_33 : i32
    %87 = arith.index_cast %86 : i32 to index
    %c0_34 = arith.constant 0 : index
    %88 = vector.load %arg8[%87, %c0_34] : memref<8x384xf32, #tpu.memory_space<vmem>>, vector<2x384xf32>
    %c0_35 = arith.constant 0 : index
    %c0_36 = arith.constant 0 : index
    %89 = vector.load %arg4[%c0_35, %c0_36] : memref<128x384xf32, #tpu.memory_space<vmem>>, vector<128x384xf32>
    %cst_37 = arith.constant dense<0.000000e+00> : vector<2x384xf32>
    %90 = tpu.matmul %81, %89, %cst_37 {dimension_numbers = #tpu.dot_dimension_numbers<[1], [0], [0], [1], [0, 0, 1, 1], [], []>} : vector<2x128xf32>, vector<128x384xf32>, vector<2x384xf32> -> vector<2x384xf32>
    %91 = vector.extract_strided_slice %88 {offsets = [0, 0], sizes = [2, 128], strides = [1, 1]} : vector<2x384xf32> to vector<2x128xf32>
    %92 = vector.extract_strided_slice %90 {offsets = [0, 0], sizes = [2, 128], strides = [1, 1]} : vector<2x384xf32> to vector<2x128xf32>
    %93 = arith.addf %91, %92 : vector<2x128xf32>
    %94 = arith.negf %93 : vector<2x128xf32>
    %95 = math.exp %94 : vector<2x128xf32>
    %cst_38 = arith.constant 1.000000e+00 : f32
    %96 = vector.broadcast %cst_38 : f32 to vector<2x128xf32>
    %97 = arith.addf %96, %95 : vector<2x128xf32>
    %98 = arith.divf %96, %97 : vector<2x128xf32>
    %99 = vector.extract_strided_slice %88 {offsets = [0, 128], sizes = [2, 128], strides = [1, 1]} : vector<2x384xf32> to vector<2x128xf32>
    %100 = vector.extract_strided_slice %90 {offsets = [0, 128], sizes = [2, 128], strides = [1, 1]} : vector<2x384xf32> to vector<2x128xf32>
    %101 = arith.addf %99, %100 : vector<2x128xf32>
    %102 = arith.negf %101 : vector<2x128xf32>
    %103 = math.exp %102 : vector<2x128xf32>
    %cst_39 = arith.constant 1.000000e+00 : f32
    %104 = vector.broadcast %cst_39 : f32 to vector<2x128xf32>
    %105 = arith.addf %104, %103 : vector<2x128xf32>
    %106 = arith.divf %104, %105 : vector<2x128xf32>
    %107 = vector.extract_strided_slice %88 {offsets = [0, 256], sizes = [2, 128], strides = [1, 1]} : vector<2x384xf32> to vector<2x128xf32>
    %108 = vector.extract_strided_slice %90 {offsets = [0, 256], sizes = [2, 128], strides = [1, 1]} : vector<2x384xf32> to vector<2x128xf32>
    %109 = arith.addf %108, %12 : vector<2x128xf32>
    %110 = arith.mulf %98, %109 : vector<2x128xf32>
    %111 = arith.addf %107, %110 : vector<2x128xf32>
    %112 = math.tanh %111 : vector<2x128xf32>
    %cst_40 = arith.constant 1.000000e+00 : f32
    %113 = vector.broadcast %cst_40 : f32 to vector<2x128xf32>
    %114 = arith.subf %113, %106 : vector<2x128xf32>
    %115 = arith.mulf %114, %112 : vector<2x128xf32>
    %116 = arith.mulf %106, %81 : vector<2x128xf32>
    %117 = arith.addf %115, %116 : vector<2x128xf32>
    %118 = arith.index_cast %c2_i32_32 : i32 to index
    %c0_41 = arith.constant 0 : index
    %c0_42 = arith.constant 0 : index
    %119 = vector.load %arg6[%118, %c0_41, %c0_42] : memref<4x2x128xf32, #tpu.memory_space<vmem>>, vector<1x2x128xf32>
    %120 = vector.shape_cast %119 : vector<1x2x128xf32> to vector<2x128xf32>
    %121 = vector.shape_cast %117 : vector<2x128xf32> to vector<1x2x128xf32>
    tpu.vector_store %arg6[%118, %c0_41, %c0_42], %121 {strides = array<i32>} : memref<4x2x128xf32, #tpu.memory_space<vmem>>, vector<1x2x128xf32>,
    %c3_i32 = arith.constant 3 : i32
    %c2_i32_43 = arith.constant 2 : i32
    %122 = arith.muli %c3_i32, %c2_i32_43 : i32
    %123 = arith.index_cast %122 : i32 to index
    %c0_44 = arith.constant 0 : index
    %124 = vector.load %arg8[%123, %c0_44] : memref<8x384xf32, #tpu.memory_space<vmem>>, vector<2x384xf32>
    %c0_45 = arith.constant 0 : index
    %c0_46 = arith.constant 0 : index
    %125 = vector.load %arg4[%c0_45, %c0_46] : memref<128x384xf32, #tpu.memory_space<vmem>>, vector<128x384xf32>
    %cst_47 = arith.constant dense<0.000000e+00> : vector<2x384xf32>
    %126 = tpu.matmul %117, %125, %cst_47 {dimension_numbers = #tpu.dot_dimension_numbers<[1], [0], [0], [1], [0, 0, 1, 1], [], []>} : vector<2x128xf32>, vector<128x384xf32>, vector<2x384xf32> -> vector<2x384xf32>
    %127 = vector.extract_strided_slice %124 {offsets = [0, 0], sizes = [2, 128], strides = [1, 1]} : vector<2x384xf32> to vector<2x128xf32>
    %128 = vector.extract_strided_slice %126 {offsets = [0, 0], sizes = [2, 128], strides = [1, 1]} : vector<2x384xf32> to vector<2x128xf32>
    %129 = arith.addf %127, %128 : vector<2x128xf32>
    %130 = arith.negf %129 : vector<2x128xf32>
    %131 = math.exp %130 : vector<2x128xf32>
    %cst_48 = arith.constant 1.000000e+00 : f32
    %132 = vector.broadcast %cst_48 : f32 to vector<2x128xf32>
    %133 = arith.addf %132, %131 : vector<2x128xf32>
    %134 = arith.divf %132, %133 : vector<2x128xf32>
    %135 = vector.extract_strided_slice %124 {offsets = [0, 128], sizes = [2, 128], strides = [1, 1]} : vector<2x384xf32> to vector<2x128xf32>
    %136 = vector.extract_strided_slice %126 {offsets = [0, 128], sizes = [2, 128], strides = [1, 1]} : vector<2x384xf32> to vector<2x128xf32>
    %137 = arith.addf %135, %136 : vector<2x128xf32>
    %138 = arith.negf %137 : vector<2x128xf32>
    %139 = math.exp %138 : vector<2x128xf32>
    %cst_49 = arith.constant 1.000000e+00 : f32
    %140 = vector.broadcast %cst_49 : f32 to vector<2x128xf32>
    %141 = arith.addf %140, %139 : vector<2x128xf32>
    %142 = arith.divf %140, %141 : vector<2x128xf32>
    %143 = vector.extract_strided_slice %124 {offsets = [0, 256], sizes = [2, 128], strides = [1, 1]} : vector<2x384xf32> to vector<2x128xf32>
    %144 = vector.extract_strided_slice %126 {offsets = [0, 256], sizes = [2, 128], strides = [1, 1]} : vector<2x384xf32> to vector<2x128xf32>
    %145 = arith.addf %144, %12 : vector<2x128xf32>
    %146 = arith.mulf %134, %145 : vector<2x128xf32>
    %147 = arith.addf %143, %146 : vector<2x128xf32>
    %148 = math.tanh %147 : vector<2x128xf32>
    %cst_50 = arith.constant 1.000000e+00 : f32
    %149 = vector.broadcast %cst_50 : f32 to vector<2x128xf32>
    %150 = arith.subf %149, %142 : vector<2x128xf32>
    %151 = arith.mulf %150, %148 : vector<2x128xf32>
    %152 = arith.mulf %142, %117 : vector<2x128xf32>
    %153 = arith.addf %151, %152 : vector<2x128xf32>
    %154 = arith.index_cast %c3_i32 : i32 to index
    %c0_51 = arith.constant 0 : index
    %c0_52 = arith.constant 0 : index
    %155 = vector.load %arg6[%154, %c0_51, %c0_52] : memref<4x2x128xf32, #tpu.memory_space<vmem>>, vector<1x2x128xf32>
    %156 = vector.shape_cast %155 : vector<1x2x128xf32> to vector<2x128xf32>
    %157 = vector.shape_cast %153 : vector<2x128xf32> to vector<1x2x128xf32>
    tpu.vector_store %arg6[%154, %c0_51, %c0_52], %157 {strides = array<i32>} : memref<4x2x128xf32, #tpu.memory_space<vmem>>, vector<1x2x128xf32>,
    %c4_i32 = arith.constant 4 : i32
    %c0_53 = arith.constant 0 : index
    %c0_54 = arith.constant 0 : index
    %158 = vector.load %arg7[%c0_53, %c0_54] : memref<2x128xf32, #tpu.memory_space<vmem>>, vector<2x128xf32>
    tpu.vector_store %arg7[%c0_53, %c0_54], %153 {strides = array<i32>} : memref<2x128xf32, #tpu.memory_space<vmem>>, vector<2x128xf32>,
    return
  }
  func.func @transform_0(%arg0: i32) -> (i32, i32) {
    %c0_i32 = arith.constant 0 : i32
    %c0_i32_0 = arith.constant 0 : i32
    return %arg0, %c0_i32 : i32, i32
  }
  func.func @transform_1(%arg0: i32) -> (i32, i32) {
    %c0_i32 = arith.constant 0 : i32
    %c0_i32_0 = arith.constant 0 : i32
    %c0_i32_1 = arith.constant 0 : i32
    return %c0_i32, %c0_i32_0 : i32, i32
  }
  func.func @transform_2(%arg0: i32) -> (i32, i32) {
    %c0_i32 = arith.constant 0 : i32
    %c0_i32_0 = arith.constant 0 : i32
    %c0_i32_1 = arith.constant 0 : i32
    return %c0_i32, %c0_i32_0 : i32, i32
  }
  func.func @transform_3(%arg0: i32) -> (i32, i32) {
    %c0_i32 = arith.constant 0 : i32
    %c0_i32_0 = arith.constant 0 : i32
    %c0_i32_1 = arith.constant 0 : i32
    return %c0_i32, %c0_i32_0 : i32, i32
  }
  func.func @transform_4(%arg0: i32) -> (i32, i32) {
    %c0_i32 = arith.constant 0 : i32
    %c0_i32_0 = arith.constant 0 : i32
    %c0_i32_1 = arith.constant 0 : i32
    return %c0_i32, %c0_i32_0 : i32, i32
  }
  func.func @transform_5(%arg0: i32) -> (i32, i32, i32) {
    %c0_i32 = arith.constant 0 : i32
    %c0_i32_0 = arith.constant 0 : i32
    %c0_i32_1 = arith.constant 0 : i32
    return %arg0, %c0_i32, %c0_i32_0 : i32, i32, i32
  }
}

</mosaic_0001>

<bundles_post_ra>
// kernel: tpu_custom_call.1
= control target key start
LH: loop header
LB: loop body
LE: loop exit
PB: predicated region body
PF: predicated region fallthrough
CT: control target
= control target key end

     0   :  { %10 = vsyncpa [#allocation5], 0  ;;  %s4248_s0 = inlined_call_operand.hbm [shape: f32[16,1024], index: 0, kind: input, shape index: {}]   ;;  %s4249_s1 = inlined_call_operand.hbm [shape: f32[1024,384], index: 1, kind: input, shape index: {}]   ;;  %s4250_s2 = inlined_call_operand.hbm [shape: f32[1,384], index: 2, kind: input, shape index: {}]   ;;  %s4251_s3 = inlined_call_operand.hbm [shape: f32[128,384], index: 3, kind: input, shape index: {}]   ;;  %s4252_s4 = inlined_call_operand.hbm [shape: f32[1,128], index: 4, kind: input, shape index: {}]   ;;  %s4253_s5 = inlined_call_operand.hbm [shape: f32[8,2,128], index: 5, kind: output, shape index: {}]  }
   0x1   :  { %12 = vsyncpa [#allocation5 + $0x1], 0 }
   0x2   :  { %13 = vsyncpa [#allocation8], 0 }
   0x3   :  { %14 = vsyncpa [#allocation11], 0 }
   0x4   :  { %15 = vsyncpa [#allocation6], 0 }
   0x5   :  { %17 = vsyncpa [#allocation6 + $0x1], 0  ;;  %s3712_s18 = smov 0   ;;  %s3714_s19 = smov 0  }
   0x6   :  { %s3716_s20 = smov 0   ;;  %s3718_s21 = smov 0  }
   0x7 LB: > { %s3668_s22 = smov [#allocation7]   ;;  %s3733_s24 = sadd.s32 4294967295, %s3666_s21   ;;  %s3666_s21 = sphi %s3718_s21, %s4278_s21   ;;  %s3662_s20 = sphi %s3716_s20, %s4277_s20   ;;  %s3658_s19 = sphi %s3714_s19, %s4276_s19   ;;  %s3654_s18 = sphi %s3712_s18, %s4275_s18  }
   0x8   : > { %s176_s23 = sshll.u32 %s3668_s22, 4  ;;  %p2315_p0 = scmp.ge.s32.totalorder %s3666_s21, 1  ;;  %s3739_s23 = int_to_ptr.vmem [resolvable:$true] %s176_s23 }
   0x9   : > { %p4254_p1 = scmp.eq.s32.totalorder %s3733_s24, 0  ;;  %p164_p2 = scmp.lt.s32.totalorder %s3666_s21, 3 }
   0xa   : > { %s3669_s26 = smov [#allocation10]   ;;  %s3670_s29 = smov [#allocation9]  }
   0xb   : > { %p3741_p4 = pnand %p2315_p0, %p164_p2  ;;  %s200_s27 = sshll.u32 %s3669_s26, 4  ;;  %s3754_s27 = int_to_ptr.vmem [resolvable:$true] %s200_s27 }
   0xc   : > { %s190_s30 = sshll.u32 %s3670_s29, 4  ;;  %s3450_s8 = scalar_lea.hbm %s4249_s1, 49152  ;;  %s3756_s30 = int_to_ptr.vmem [resolvable:$true] %s190_s30 }
   0xd   : > { %s4257_s25 = scalar_select %p3741_p4, 1, 0 }
   0xe   : > { %p3335_p6 = pneg %p3741_p4  ;;  %p3451_p8 = scmp.ne.s32.totalorder %s4249_s1, %s3450_s8 }
   0xf   : > { %p3457_p12 = scmp.lt.u32.totalorder %s3450_s8, %s4249_s1 }
  0x10   : > { %p3750_p7 = pnand %p3335_p6, %p4254_p1 }
  0x12   : > { %p3766_p9 = pneg %p3750_p7 }
  0x14   : > { %p3453_p10 = pnand %p3766_p9, %p3451_p8 }
  0x16   : > { %p3454_p11 = pneg %p3453_p10 }
  0x18   : > { %p3459_p13 = pnand %p3457_p12, %p3454_p11 }
  0x1a   : > { %3462 = shalt.err (!%p3459_p13)
}
  0x1b   : > { %s3463_s14 = scalar_lea.vmem %s3739_s23, 49152  ;;  %p3471_p5 = scmp.lt.s32.totalorder %s3739_s23, %s3739_s23 }
  0x1c   : > { %p3464_p0 = scmp.ne.s32.totalorder %s3739_s23, %s3463_s14  ;;  %p3472_p3 = scmp.lt.s32.totalorder %s3463_s14, %s3463_s14 }
  0x1e   : > { %p3466_p2 = pnand %p3464_p0, %p3766_p9  ;;  %p3473_p8 = por %p3472_p3, %p3471_p5 }
  0x20   : > { %p3467_p6 = pneg %p3466_p2 }
  0x22   : > { %p3474_p10 = pnand %p3473_p8, %p3467_p6 }
  0x24   : > { %3477 = shalt.err (!%p3474_p10)
}
  0x25   : > { %s3671_s15 = smov 384   ;;  %s3672_s16 = smov 24  }
  0x26   : > { %3338 = dma.hbm_to_vmem [thread:$0]  (!%p3750_p7), %s4249_s1, 49152, %s3739_s23, [#allocation8], %s3671_s15, %s3671_s15, %s3672_s16  }
  0x27   : > { %s3478_s6 = scalar_lea.hbm %s4251_s3, 6144 }
  0x28   : > { %p3479_p3 = scmp.ne.s32.totalorder %s4251_s3, %s3478_s6  ;;  %p3485_p12 = scmp.lt.u32.totalorder %s3478_s6, %s4251_s3 }
  0x2a   : > { %p3481_p5 = pnand %p3479_p3, %p3766_p9 }
  0x2c   : > { %p3482_p11 = pneg %p3481_p5 }
  0x2e   : > { %p3487_p13 = pnand %p3485_p12, %p3482_p11 }
  0x30   : > { %3490 = shalt.err (!%p3487_p13)
}
  0x31   : > { %s3491_s23 = scalar_lea.vmem %s3754_s27, 6144  ;;  %p3499_p8 = scmp.lt.s32.totalorder %s3754_s27, %s3754_s27 }
  0x32   : > { %p3492_p0 = scmp.ne.s32.totalorder %s3754_s27, %s3491_s23  ;;  %p3500_p10 = scmp.lt.s32.totalorder %s3491_s23, %s3491_s23 }
  0x34   : > { %p3494_p2 = pnand %p3492_p0, %p3766_p9  ;;  %p3501_p3 = por %p3500_p10, %p3499_p8 }
  0x36   : > { %p3495_p6 = pneg %p3494_p2 }
  0x38   : > { %p3502_p5 = pnand %p3501_p3, %p3495_p6 }
  0x3a   : > { %3505 = shalt.err (!%p3502_p5)
}
  0x3b   : > { %3344 = dma.hbm_to_vmem [thread:$0]  (!%p3750_p7), %s4251_s3, 6144, %s3754_s27, [#allocation11], %s3671_s15, %s3671_s15, %s3672_s16  }
  0x3c   : > { %s3506_s22 = scalar_lea.hbm %s4250_s2, 48 }
  0x3d   : > { %p3507_p11 = scmp.ne.s32.totalorder %s4250_s2, %s3506_s22  ;;  %p3513_p0 = scmp.lt.u32.totalorder %s3506_s22, %s4250_s2 }
  0x3f   : > { %p3509_p12 = pnand %p3507_p11, %p3766_p9 }
  0x41   : > { %p3510_p13 = pneg %p3509_p12 }
  0x43   : > { %p3515_p2 = pnand %p3513_p0, %p3510_p13 }
  0x45   : > { %3518 = shalt.err (!%p3515_p2)
}
  0x46   : > { %s3519_s27 = scalar_lea.vmem %s3756_s30, 48  ;;  %s3526_s15 = scalar_lea.vmem %s3756_s30, 64 }
  0x47   : > { %p3520_p6 = scmp.ne.s32.totalorder %s3756_s30, %s3519_s27  ;;  %p3527_p3 = scmp.lt.s32.totalorder %s3756_s30, %s3756_s30 }
  0x48   : > { %p3528_p5 = scmp.lt.s32.totalorder %s3526_s15, %s3519_s27 }
  0x49   : > { %p3522_p8 = pnand %p3520_p6, %p3766_p9 }
  0x4a   : > { %p3529_p11 = por %p3528_p5, %p3527_p3 }
  0x4b   : > { %p3523_p10 = pneg %p3522_p8 }
  0x4d   : > { %p3530_p12 = pnand %p3529_p11, %p3523_p10 }
  0x4f   : > { %3533 = shalt.err (!%p3530_p12)
}
  0x50   : > { %3341 = dma.hbm_to_vmem [thread:$0]  (!%p3750_p7), %s4250_s2, 48, %s3756_s30, [#allocation8]  }
  0x51   : > { %s3673_s9 = smov [#allocation12]   ;;  %s3534_s13 = scalar_lea.hbm %s4252_s4, 16 }
  0x52   : > { %s214_s10 = sshll.u32 %s3673_s9, 4  ;;  %p3535_p13 = scmp.ne.s32.totalorder %s4252_s4, %s3534_s13  ;;  %s215_s10 = int_to_ptr.vmem [resolvable:$true] %s214_s10 }
  0x53   : > { %p3541_p6 = scmp.lt.u32.totalorder %s3534_s13, %s4252_s4 }
  0x54   : > { %p3537_p0 = pnand %p3535_p13, %p3766_p9 }
  0x56   : > { %p3538_p2 = pneg %p3537_p0 }
  0x58   : > { %p3543_p8 = pnand %p3541_p6, %p3538_p2 }
  0x5a   : > { %3546 = shalt.err (!%p3543_p8)
}
  0x5b   : > { %s3547_s30 = scalar_lea.vmem %s215_s10, 16  ;;  %s3554_s29 = scalar_lea.vmem %s215_s10, 32 }
  0x5c   : > { %p3548_p10 = scmp.ne.s32.totalorder %s215_s10, %s3547_s30  ;;  %p3555_p11 = scmp.lt.s32.totalorder %s215_s10, %s215_s10 }
  0x5d   : > { %p3556_p12 = scmp.lt.s32.totalorder %s3554_s29, %s3547_s30 }
  0x5e   : > { %p3550_p3 = pnand %p3548_p10, %p3766_p9 }
  0x5f   : > { %p3557_p1 = por %p3556_p12, %p3555_p11 }
  0x60   : > { %p3551_p5 = pneg %p3550_p3 }
  0x62   : > { %p3558_p4 = pnand %p3557_p1, %p3551_p5 }
  0x64   : > { %3561 = shalt.err (!%p3558_p4)
}
  0x65   : > { %3347 = dma.hbm_to_vmem [thread:$0]  (!%p3750_p7), %s4252_s4, 16, %s215_s10, [#allocation11]  }
  0x66   : > { %s2314_s11 = sadd.s32 4294967294, %s3666_s21   ;;  %s3854_s28 = sadd.s32 1, %s3666_s21  }
  0x67   : > { %s27_s27 = ssub.s32 %s3666_s21, %s3854_s28  ;;  %s30_s15 = sadd.s32 1, %s3662_s20 }
  0x68   : > { %p28_p1 = scmp.eq.s32.totalorder %s27_s27, 0  ;;  %p37_p4 = scmp.ne.s32.totalorder %s3662_s20, %s3658_s19 }
  0x69   : > { %p38_p9 = scmp.eq.s32.totalorder %s3666_s21, 0  ;;  %p43_p13 = scmp.ne.s32.totalorder %s3658_s19, %s3654_s18 }
  0x6a   : > { %s3865_s16 = scalar_select %p28_p1, %s3662_s20, %s30_s15  }
  0x6b   : > { %p3867_p0 = por %p38_p9, %p37_p4  ;;  %p4261_p2 = scmp.eq.s32.totalorder %s3733_s24, 0 }
  0x6c   : > { %p151_p6 = scmp.eq.s32.totalorder %s3733_s24, 1  ;;  %p157_p8 = scmp.eq.s32.totalorder %s2314_s11, 1 }
  0x6d   : > { %p3873_p7 = por %p4261_p2, %p43_p13  ;;  %p3360_p10 = scmp.lt.s32.totalorder %s3666_s21, 2 }
  0x6e   : > { %s225_s10 = sand.u32 1, %s3662_s20   ;;  %p3880_p3 = por %p151_p6, %p37_p4 }
  0x6f   : > { %p3884_p5 = por %p157_p8, %p43_p13  ;;  %s2321_s13 = sshll.u32 %s225_s10, 6 }
  0x70   : > { %s4263_s23 = scalar_select %p3880_p3, 1, 0 }
  0x71   : > { %s4264_s12 = scalar_select %p3884_p5, 1, 0 }
  0x72   : > { %s2349_s14 = sshll.u32 %s3666_s21, 10  ;;  %s229_s30 = scalar_lea.vmem [#allocation4], %s2321_s13 }
  0x73   : > { %s3892_s26 = scalar_lea.hbm %s4248_s0, %s2349_s14  ;;  %s237_s29 = sshll.u32 %s229_s30, 4  ;;  %s3894_s29 = int_to_ptr.vmem [resolvable:$true] %s237_s29 }
  0x74   : > { %p3898_p11 = pnand %p3360_p10, %p3867_p0  ;;  %s226_s7 = scalar_lea.sflag [#allocation5], %s225_s10 }
  0x75   : > { %s3562_s11 = scalar_lea.hbm %s3892_s26, 1024  ;;  %s3567_s13 = scalar_lea.hbm %s4248_s0, 2048 }
  0x76   : > { %p3563_p12 = scmp.ne.s32.totalorder %s3892_s26, %s3562_s11  ;;  %p3564_p1 = pneg %p3898_p11 }
  0x77   : > { %p3568_p13 = scmp.lt.u32.totalorder %s3892_s26, %s4248_s0  ;;  %p3569_p0 = scmp.lt.u32.totalorder %s3567_s13, %s3562_s11 }
  0x78   : > { %p3565_p4 = pnand %p3564_p1, %p3563_p12  ;;  %p3571_p6 = scmp.lt.u32.totalorder %s3562_s11, %s3892_s26 }
  0x79   : > { %p3570_p2 = por %p3569_p0, %p3568_p13 }
  0x7a   : > { %p3566_p9 = pneg %p3565_p4 }
  0x7b   : > { %p3572_p8 = por %p3571_p6, %p3570_p2 }
  0x7d   : > { %p3573_p10 = pnand %p3572_p8, %p3566_p9 }
  0x7f   : > { %3576 = shalt.err (!%p3573_p10)
}
  0x80   : > { %s3577_s10 = scalar_lea.vmem %s3894_s29, 1024  ;;  %s3674_s17 = smov [#allocation4]  }
  0x81   : > { %p3578_p12 = scmp.ne.s32.totalorder %s3894_s29, %s3577_s10  ;;  %s3582_s22 = sshll.u32 %s3674_s17, 4  ;;  %s3583_s22 = int_to_ptr.vmem [resolvable:$false] %s3582_s22 }
  0x82   : > { %s3584_s30 = scalar_lea.vmem %s3583_s22, 2048  ;;  %p3585_p3 = scmp.lt.s32.totalorder %s3894_s29, %s3583_s22 }
  0x83   : > { %p3580_p4 = pnand %p3578_p12, %p3564_p1  ;;  %p3586_p13 = scmp.lt.s32.totalorder %s3584_s30, %s3577_s10 }
  0x85   : > { %p3581_p5 = pneg %p3580_p4  ;;  %p3587_p0 = por %p3586_p13, %p3585_p3 }
  0x87   : > { %p3588_p2 = pnand %p3587_p0, %p3581_p5 }
  0x89   : > { %3591 = shalt.err (!%p3588_p2)
}
  0x8a   : > { %3351 = dma.hbm_to_vmem [thread:$0]  (!%p3898_p11), %s3892_s26, 1024, %s3894_s29, %s226_s7  }
  0x8b   : > { %p4266_p9 = scmp.ne.s32.totalorder %s4257_s25, 0 }
  0x8c   : > { %s3930_s11 = sand.u32 (!%p4266_p9), 1, %s3658_s19  }
  0x8d   : > { %246 = sbr.rel (%p4266_p9) target bundleno = 1500 (0x5dc), region = 40  ;;  %s2325_s27 = sshll.u32 (!%p4266_p9), %s3930_s11, 6 }
  0x8e   : > { %s249_s15 = scalar_lea.sflag (!%p4266_p9), [#allocation5], %s3930_s11  ;;  %s3934_s13 = scalar_lea.vmem (!%p4266_p9), [#allocation4], %s2325_s27 }
  0x94   : > { %3637 = dma.done.wait (%p3873_p7), %s249_s15, 1024  }
  0x95   : > { %3639 = vsyncadd (%p3873_p7), %s249_s15, 4294966272  ;;  %p4267_p3 = scmp.eq.s32.totalorder %s3733_s24, 0 }
  0x97   : > { %3641 = dma.done.wait (%p4267_p3), [#allocation8], 49200   ;;  %p4268_p5 = pmov %p4267_p3 }
  0x98   : > { %p4269_p11 = pmov %p4267_p3 }
  0x99   : > { %3643 = vsyncadd (%p4268_p5), [#allocation8], 4294918096 }
  0x9a   : > { %3645 = dma.done.wait (%p4269_p11), [#allocation11], 6160   ;;  %p4270_p1 = pmov %p4267_p3 }
  0x9b   : > { %s2330_s25 = sshll.u32 %s3930_s11, 3  ;;  %p4271_p6 = scmp.ne.s32.totalorder %s3733_s24, 0 }
  0x9c   : > { %3647 = vsyncadd (%p4270_p1), [#allocation11], 4294961136  ;;  %s3949_s26 = scalar_lea.vmem [#allocation13], %s2330_s25  ;;  %v3675_v0 = vmov (!%p4271_p6), 0.0  }
  0x9d   : > { %299 = sbr.rel (%p4271_p6) target bundleno = 164 (0xa4), region = 64  ;;  %300 = vst [vmem:[#allocation2] sm:$0x3] (!%p4271_p6), %v3675_v0 }
  0xa4 PF: > { %v310_v1 = vld [vmem:[#allocation7 + $0x8] sm:$0xff]  ;;  %v313_v2 = vld [vmem:[#allocation7 + $0x20] sm:$0xff]  ;;  %v312_v5 = vld [vmem:[#allocation7 + $0x18] sm:$0xff]  ;;  %vm3678_vm0 = vmmov 0   ;;  %s2350_s9 = sshll.u32 %s3733_s24, 7  ;;  %s2203_s29 = sshll.u32 %s3949_s26, 4  ;;  %s4203_s29 = int_to_ptr.vmem [resolvable:$true] %s2203_s29 }
  0xa5   : > { %v309_v3 = vld [vmem:[#allocation7] sm:$0xff]  ;;  %v2699_v4 = vpack.c.bf16 %v313_v2, %v310_v1  ;;  %v316_v6 = vld [vmem:[#allocation7 + $0x38] sm:$0xff]  ;;  %v319_v7 = vld [vmem:[#allocation7 + $0x50] sm:$0xff]  ;;  %s4201_s8 = scalar_lea.hbm %s4253_s5, %s2350_s9  ;;  %s2190_s14 = scalar_lea.sflag [#allocation6], %s3930_s11 }
  0xa6   : > { %v2701_v8 = vpack.c.bf16 %v312_v5, %v309_v3  ;;  %v2703_v9 = vpack.c.bf16 %v319_v7, %v316_v6  ;;  %v315_v10 = vld [vmem:[#allocation7 + $0x30] sm:$0xff]  ;;  %v318_v11 = vld [vmem:[#allocation7 + $0x48] sm:$0xff]  ;;  %v325_v13 = vld [vmem:[#allocation7 + $0x80] sm:$0xff]  ;;  %s3592_s10 = scalar_lea.vmem %s4203_s29, 128  ;;  %p4272_p8 = scmp.ne.s32.totalorder %s4263_s23, 0 }
  0xa7   : > { %v322_v12 = vld [vmem:[#allocation7 + $0x68] sm:$0xff]  ;;  %2700 = vmatprep.subr.bf16.mxu0 %v2699_v4  ;;  %v2705_v14 = vpack.c.bf16 %v318_v11, %v315_v10  ;;  %v359_v15 = vld [vmem:[#allocation7 + $0x190] sm:$0xff]  ;;  %v321_v19 = vld [vmem:[#allocation7 + $0x60] sm:$0xff]  ;;  %p3593_p7 = scmp.ne.s32.totalorder %s4203_s29, %s3592_s10  ;;  %s3679_s24 = smov [#allocation13]  }
  0xa8   : > { %2702 = vmatpush1.bf16.msra.mxu0 %v2701_v8  ;;  %v362_v16 = vld [vmem:[#allocation7 + $0x1a8] sm:$0xff]  ;;  %v311_v17 = vld [vmem:[#allocation7 + $0x10] sm:$0xff]  ;;  %v2707_v18 = vpack.c.bf16 %v325_v13, %v322_v12  ;;  %v324_v20 = vld [vmem:[#allocation7 + $0x78] sm:$0xff]  ;;  %s3596_s17 = sshll.u32 %s3679_s24, 4  ;;  %s3597_s17 = int_to_ptr.vmem [resolvable:$false] %s3596_s17 }
  0xa9   : > { %2704 = vmatprep.subr.bf16.mxu0 %v2703_v9  ;;  %v2955_v21 = vpack.c.bf16 %v362_v16, %v359_v15  ;;  %v314_v22 = vld [vmem:[#allocation7 + $0x28] sm:$0xff]  ;;  %v328_v24 = vld [vmem:[#allocation7 + $0x98] sm:$0xff]  ;;  %v331_v25 = vld [vmem:[#allocation7 + $0xb0] sm:$0xff]  ;;  %v2709_v30 = vpack.c.bf16 %v324_v20, %v321_v19  ;;  %p3594_p10 = pnand %p3593_p7, %p4272_p8  ;;  %s3598_s22 = scalar_lea.vmem %s3597_s17, 256 }
  0xaa   : > { %v2957_v23 = vpack.c.bf16 %v314_v22, %v311_v17  ;;  %v365_v26 = vld [vmem:[#allocation7 + $0x1c0] sm:$0xff]  ;;  %v368_v27 = vld [vmem:[#allocation7 + $0x1d8] sm:$0xff]  ;;  %v327_v31 = vld [vmem:[#allocation7 + $0x90] sm:$0xff]  ;;  %v2711_v35 = vpack.c.bf16 %v331_v25, %v328_v24  ;;  %p3599_p4 = scmp.lt.s32.totalorder %s4203_s29, %s3597_s17  ;;  %p3600_p13 = scmp.lt.s32.totalorder %s3598_s22, %s3592_s10 }
  0xab   : > { %2956 = vmatprep.subr.bf16.mxu1 %v2955_v21  ;;  %v317_v28 = vld [vmem:[#allocation7 + $0x40] sm:$0xff]  ;;  %v320_v29 = vld [vmem:[#allocation7 + $0x58] sm:$0xff]  ;;  %v330_v32 = vld [vmem:[#allocation7 + $0xa8] sm:$0xff]  ;;  %v2959_v33 = vpack.c.bf16 %v368_v27, %v365_v26  ;;  %p3595_p12 = pneg %p3594_p10 }
  0xac   : > { %2706 = vmatpush1.bf16.msra.mxu0 %v2705_v14  ;;  %2958 = vmatpush3.bf16.msra.mxu1 %v2957_v23  ;;  %v2961_v34 = vpack.c.bf16 %v320_v29, %v317_v28  ;;  %v334_v36 = vld [vmem:[#allocation7 + $0xc8] sm:$0xff]  ;;  %v371_v37 = vld [vmem:[#allocation7 + $0x1f0] sm:$0xff]  ;;  %v337_v39 = vld [vmem:[#allocation7 + $0xe0] sm:$0xff]  ;;  %v2713_v43 = vpack.c.bf16 %v330_v32, %v327_v31  ;;  %p3601_p0 = por %p3600_p13, %p3599_p4 }
  0xad   : > { %2708 = vmatprep.subr.bf16.mxu0 %v2707_v18  ;;  %v374_v38 = vld [vmem:[#allocation7 + $0x208] sm:$0xff]  ;;  %2960 = vmatprep.subr.bf16.mxu1 %v2959_v33  ;;  %v323_v41 = vld [vmem:[#allocation7 + $0x70] sm:$0xff]  ;;  %v333_v44 = vld [vmem:[#allocation7 + $0xc0] sm:$0xff]  ;;  %v2715_v48 = vpack.c.bf16 %v337_v39, %v334_v36 }
  0xae   : > { %v2963_v40 = vpack.c.bf16 %v374_v38, %v371_v37  ;;  %v326_v42 = vld [vmem:[#allocation7 + $0x88] sm:$0xff]  ;;  %v377_v46 = vld [vmem:[#allocation7 + $0x220] sm:$0xff]  ;;  %v380_v47 = vld [vmem:[#allocation7 + $0x238] sm:$0xff]  ;;  %p3602_p2 = pnand %p3601_p0, %p3595_p12 }
  0xaf   : > { %v2965_v45 = vpack.c.bf16 %v326_v42, %v323_v41  ;;  %v336_v49 = vld [vmem:[#allocation7 + $0xd8] sm:$0xff]  ;;  %v2967_v50 = vpack.c.bf16 %v380_v47, %v377_v46  ;;  %v329_v51 = vld [vmem:[#allocation7 + $0xa0] sm:$0xff]  ;;  %v343_v54 = vld [vmem:[#allocation7 + $0x110] sm:$0xff] }
  0xb0   : > { %2710 = vmatpush1.bf16.msra.mxu0 %v2709_v30  ;;  %2962 = vmatpush3.bf16.msra.mxu1 %v2961_v34  ;;  %v332_v52 = vld [vmem:[#allocation7 + $0xb8] sm:$0xff]  ;;  %v383_v55 = vld [vmem:[#allocation7 + $0x250] sm:$0xff]  ;;  %v386_v56 = vld [vmem:[#allocation7 + $0x268] sm:$0xff]  ;;  %v2717_v57 = vpack.c.bf16 %v336_v49, %v333_v44 }
  0xb1   : > { %2712 = vmatprep.subr.bf16.mxu0 %v2711_v35  ;;  %2964 = vmatprep.subr.bf16.mxu1 %v2963_v40  ;;  %v340_v53 = vld [vmem:[#allocation7 + $0xf8] sm:$0xff]  ;;  %v339_v58 = vld [vmem:[#allocation7 + $0xf0] sm:$0xff]  ;;  %v342_v59 = vld [vmem:[#allocation7 + $0x108] sm:$0xff]  ;;  %v2969_v60 = vpack.c.bf16 %v332_v52, %v329_v51  ;;  %v2971_v63 = vpack.c.bf16 %v386_v56, %v383_v55 }
  0xb2   : > { %v2719_v61 = vpack.c.bf16 %v343_v54, %v340_v53  ;;  %v346_v62 = vld [vmem:[#allocation7 + $0x128] sm:$0xff]  ;;  %v335_v0 = vld [vmem:[#allocation7 + $0xd0] sm:$0xff]  ;;  %v349_v2 = vld [vmem:[#allocation7 + $0x140] sm:$0xff]  ;;  %v2721_v5 = vpack.c.bf16 %v342_v59, %v339_v58 }
  0xb3   : > { %v338_v1 = vld [vmem:[#allocation7 + $0xe8] sm:$0xff]  ;;  %v389_v3 = vld [vmem:[#allocation7 + $0x280] sm:$0xff]  ;;  %v392_v4 = vld [vmem:[#allocation7 + $0x298] sm:$0xff]  ;;  %v2723_v9 = vpack.c.bf16 %v349_v2, %v346_v62 }
  0xb4   : > { %2714 = vmatpush1.bf16.msra.mxu0 %v2713_v43  ;;  %2966 = vmatpush3.bf16.msra.mxu1 %v2965_v45  ;;  %v345_v6 = vld [vmem:[#allocation7 + $0x120] sm:$0xff]  ;;  %v348_v7 = vld [vmem:[#allocation7 + $0x138] sm:$0xff]  ;;  %v2973_v8 = vpack.c.bf16 %v338_v1, %v335_v0  ;;  %v2975_v11 = vpack.c.bf16 %v392_v4, %v389_v3  ;;  %v355_v14 = vld [vmem:[#allocation7 + $0x170] sm:$0xff] }
  0xb5   : > { %2716 = vmatprep.subr.bf16.mxu0 %v2715_v48  ;;  %2968 = vmatprep.subr.bf16.mxu1 %v2967_v50  ;;  %v352_v10 = vld [vmem:[#allocation7 + $0x158] sm:$0xff]  ;;  %v341_v12 = vld [vmem:[#allocation7 + $0x100] sm:$0xff]  ;;  %v395_v15 = vld [vmem:[#allocation7 + $0x2b0] sm:$0xff]  ;;  %v2725_v17 = vpack.c.bf16 %v348_v7, %v345_v6 }
  0xb6   : > { %v344_v13 = vld [vmem:[#allocation7 + $0x118] sm:$0xff]  ;;  %v398_v16 = vld [vmem:[#allocation7 + $0x2c8] sm:$0xff]  ;;  %v351_v18 = vld [vmem:[#allocation7 + $0x150] sm:$0xff]  ;;  %v2727_v22 = vpack.c.bf16 %v355_v14, %v352_v10 }
  0xb7   : > { %v354_v19 = vld [vmem:[#allocation7 + $0x168] sm:$0xff]  ;;  %v2977_v20 = vpack.c.bf16 %v344_v13, %v341_v12  ;;  %v2979_v23 = vpack.c.bf16 %v398_v16, %v395_v15  ;;  %v347_v24 = vld [vmem:[#allocation7 + $0x130] sm:$0xff]  ;;  %v361_v27 = vld [vmem:[#allocation7 + $0x1a0] sm:$0xff] }
  0xb8   : > { %2718 = vmatpush1.bf16.msra.mxu0 %v2717_v57  ;;  %2970 = vmatpush3.bf16.msra.mxu1 %v2969_v60  ;;  %v358_v21 = vld [vmem:[#allocation7 + $0x188] sm:$0xff]  ;;  %v401_v28 = vld [vmem:[#allocation7 + $0x2e0] sm:$0xff]  ;;  %v404_v29 = vld [vmem:[#allocation7 + $0x2f8] sm:$0xff]  ;;  %v2729_v30 = vpack.c.bf16 %v354_v19, %v351_v18 }
  0xb9   : > { %2720 = vmatprep.subr.bf16.mxu0 %v2719_v61  ;;  %2972 = vmatprep.subr.bf16.mxu1 %v2971_v63  ;;  %v350_v25 = vld [vmem:[#allocation7 + $0x148] sm:$0xff]  ;;  %v357_v31 = vld [vmem:[#allocation7 + $0x180] sm:$0xff]  ;;  %v360_v32 = vld [vmem:[#allocation7 + $0x198] sm:$0xff]  ;;  %v2731_v34 = vpack.c.bf16 %v361_v27, %v358_v21  ;;  %v2983_v36 = vpack.c.bf16 %v404_v29, %v401_v28 }
  0xba   : > { %v302_v26 = vld [vmem:[%s3934_s13 + $0x8] sm:$0xff]  ;;  %v2981_v33 = vpack.c.bf16 %v350_v25, %v347_v24  ;;  %v364_v35 = vld [vmem:[#allocation7 + $0x1b8] sm:$0xff]  ;;  %v353_v37 = vld [vmem:[#allocation7 + $0x160] sm:$0xff]  ;;  %v2733_v42 = vpack.c.bf16 %v360_v32, %v357_v31 }
  0xbb   : > { %1058 = vmatprep.mubr.f32.mxu1 %v302_v26  ;;  %774 = vmatprep.mubr.f32.mxu0 %v302_v26  ;;  %v356_v38 = vld [vmem:[#allocation7 + $0x178] sm:$0xff]  ;;  %v367_v39 = vld [vmem:[#allocation7 + $0x1d0] sm:$0xff]  ;;  %v458_v41 = vld [vmem:[#allocation7 + $0x4a8] sm:$0xff] }
  0xbc   : > { %2722 = vmatpush1.bf16.msra.mxu0 %v2721_v5  ;;  %2974 = vmatpush3.bf16.msra.mxu1 %v2973_v8  ;;  %v455_v40 = vld [vmem:[#allocation7 + $0x490] sm:$0xff]  ;;  %v366_v44 = vld [vmem:[#allocation7 + $0x1c8] sm:$0xff]  ;;  %v2985_v45 = vpack.c.bf16 %v356_v38, %v353_v37  ;;  %v2735_v46 = vpack.c.bf16 %v367_v39, %v364_v35  ;;  %v373_v51 = vld [vmem:[#allocation7 + $0x200] sm:$0xff] }
  0xbd   : > { %2724 = vmatprep.subr.bf16.mxu0 %v2723_v9  ;;  %2976 = vmatprep.subr.bf16.mxu1 %v2975_v11  ;;  %v363_v43 = vld [vmem:[#allocation7 + $0x1b0] sm:$0xff]  ;;  %v370_v47 = vld [vmem:[#allocation7 + $0x1e8] sm:$0xff]  ;;  %v2987_v48 = vpack.c.bf16 %v458_v41, %v455_v40  ;;  %v461_v52 = vld [vmem:[#allocation7 + $0x4c0] sm:$0xff] }
  0xbe   : > { %v407_v49 = vld [vmem:[#allocation7 + $0x310] sm:$0xff]  ;;  %v410_v50 = vld [vmem:[#allocation7 + $0x328] sm:$0xff]  ;;  %v464_v53 = vld [vmem:[#allocation7 + $0x4d8] sm:$0xff]  ;;  %v2737_v54 = vpack.c.bf16 %v366_v44, %v363_v43  ;;  %v2739_v59 = vpack.c.bf16 %v373_v51, %v370_v47 }
  0xbf   : > { %v369_v55 = vld [vmem:[#allocation7 + $0x1e0] sm:$0xff]  ;;  %v372_v56 = vld [vmem:[#allocation7 + $0x1f8] sm:$0xff]  ;;  %v2989_v58 = vpack.c.bf16 %v410_v50, %v407_v49  ;;  %v2991_v61 = vpack.c.bf16 %v464_v53, %v461_v52  ;;  %v379_v0 = vld [vmem:[#allocation7 + $0x230] sm:$0xff] }
  0xc0   : > { %2726 = vmatpush1.bf16.msra.mxu0 %v2725_v17  ;;  %2978 = vmatpush3.bf16.msra.mxu1 %v2977_v20  ;;  %v3955_v57 = vld [vmem:[%s3934_s13] sm:$0xff]  ;;  %v376_v60 = vld [vmem:[#allocation7 + $0x218] sm:$0xff]  ;;  %v467_v1 = vld [vmem:[#allocation7 + $0x4f0] sm:$0xff]  ;;  %v2741_v3 = vpack.c.bf16 %v372_v56, %v369_v55 }
  0xc1   : > { %2728 = vmatprep.subr.bf16.mxu0 %v2727_v22  ;;  %2980 = vmatprep.subr.bf16.mxu1 %v2979_v23  ;;  %v413_v62 = vld [vmem:[#allocation7 + $0x340] sm:$0xff]  ;;  %v416_v63 = vld [vmem:[#allocation7 + $0x358] sm:$0xff]  ;;  %v470_v2 = vld [vmem:[#allocation7 + $0x508] sm:$0xff]  ;;  %v2743_v7 = vpack.c.bf16 %v379_v0, %v376_v60 }
  0xc2   : > { %v375_v4 = vld [vmem:[#allocation7 + $0x210] sm:$0xff]  ;;  %v378_v5 = vld [vmem:[#allocation7 + $0x228] sm:$0xff]  ;;  %v2993_v6 = vpack.c.bf16 %v416_v63, %v413_v62  ;;  %v2995_v9 = vpack.c.bf16 %v470_v2, %v467_v1  ;;  %v385_v12 = vld [vmem:[#allocation7 + $0x260] sm:$0xff] }
  0xc3   : > { %v382_v8 = vld [vmem:[#allocation7 + $0x248] sm:$0xff]  ;;  %v419_v10 = vld [vmem:[#allocation7 + $0x370] sm:$0xff]  ;;  %v473_v13 = vld [vmem:[#allocation7 + $0x520] sm:$0xff]  ;;  %v2745_v15 = vpack.c.bf16 %v378_v5, %v375_v4 }
  0xc4   : > { %2730 = vmatpush1.bf16.msra.mxu0 %v2729_v30  ;;  %2982 = vmatpush3.bf16.msra.mxu1 %v2981_v33  ;;  %v422_v11 = vld [vmem:[#allocation7 + $0x388] sm:$0xff]  ;;  %v476_v14 = vld [vmem:[#allocation7 + $0x538] sm:$0xff]  ;;  %v381_v16 = vld [vmem:[#allocation7 + $0x240] sm:$0xff]  ;;  %v2747_v19 = vpack.c.bf16 %v385_v12, %v382_v8 }
  0xc5   : > { %2732 = vmatprep.subr.bf16.mxu0 %v2731_v34  ;;  %2984 = vmatprep.subr.bf16.mxu1 %v2983_v36  ;;  %v384_v17 = vld [vmem:[#allocation7 + $0x258] sm:$0xff]  ;;  %v2997_v18 = vpack.c.bf16 %v422_v11, %v419_v10  ;;  %v2999_v21 = vpack.c.bf16 %v476_v14, %v473_v13  ;;  %v425_v22 = vld [vmem:[#allocation7 + $0x3a0] sm:$0xff]  ;;  %v391_v24 = vld [vmem:[#allocation7 + $0x290] sm:$0xff] }
  0xc6   : > { %v388_v20 = vld [vmem:[#allocation7 + $0x278] sm:$0xff]  ;;  %v479_v25 = vld [vmem:[#allocation7 + $0x550] sm:$0xff]  ;;  %v482_v26 = vld [vmem:[#allocation7 + $0x568] sm:$0xff]  ;;  %v2749_v28 = vpack.c.bf16 %v384_v17, %v381_v16 }
  0xc7   : > { %v428_v23 = vld [vmem:[#allocation7 + $0x3b8] sm:$0xff]  ;;  %v387_v29 = vld [vmem:[#allocation7 + $0x270] sm:$0xff]  ;;  %v390_v30 = vld [vmem:[#allocation7 + $0x288] sm:$0xff]  ;;  %v2751_v32 = vpack.c.bf16 %v391_v24, %v388_v20  ;;  %v3003_v34 = vpack.c.bf16 %v482_v26, %v479_v25 }
  0xc8   : > { %2734 = vmatpush1.bf16.msra.mxu0 %v2733_v42  ;;  %2986 = vmatpush3.bf16.msra.mxu1 %v2985_v45  ;;  %v3959_v27 = vld [vmem:[%s3934_s13 + $0x18] sm:$0xff]  ;;  %v3001_v31 = vpack.c.bf16 %v428_v23, %v425_v22  ;;  %v394_v33 = vld [vmem:[#allocation7 + $0x2a8] sm:$0xff]  ;;  %v431_v35 = vld [vmem:[#allocation7 + $0x3d0] sm:$0xff]  ;;  %v2753_v40 = vpack.c.bf16 %v390_v30, %v387_v29 }
  0xc9   : > { %2736 = vmatprep.subr.bf16.mxu0 %v2735_v46  ;;  %2988 = vmatprep.subr.bf16.mxu1 %v2987_v48  ;;  %v434_v36 = vld [vmem:[#allocation7 + $0x3e8] sm:$0xff]  ;;  %v397_v37 = vld [vmem:[#allocation7 + $0x2c0] sm:$0xff]  ;;  %v488_v39 = vld [vmem:[#allocation7 + $0x598] sm:$0xff] }
  0xca   : > { %v485_v38 = vld [vmem:[#allocation7 + $0x580] sm:$0xff]  ;;  %v396_v42 = vld [vmem:[#allocation7 + $0x2b8] sm:$0xff]  ;;  %v3005_v43 = vpack.c.bf16 %v434_v36, %v431_v35  ;;  %v2755_v44 = vpack.c.bf16 %v397_v37, %v394_v33  ;;  %v403_v49 = vld [vmem:[#allocation7 + $0x2f0] sm:$0xff] }
  0xcb   : > { %1059 = vmatmul.mubr.f32.vlgmr.msra.gmra.mrb[0].mxu1 %v3955_v57  ;;  %v393_v41 = vld [vmem:[#allocation7 + $0x2a0] sm:$0xff]  ;;  %v400_v45 = vld [vmem:[#allocation7 + $0x2d8] sm:$0xff]  ;;  %v3007_v46 = vpack.c.bf16 %v488_v39, %v485_v38  ;;  %v491_v50 = vld [vmem:[#allocation7 + $0x5b0] sm:$0xff] }
  0xcc   : > { %2738 = vmatpush1.bf16.msra.mxu0 %v2737_v54  ;;  %2990 = vmatpush3.bf16.msra.mxu1 %v2989_v58  ;;  %v437_v47 = vld [vmem:[#allocation7 + $0x400] sm:$0xff]  ;;  %v440_v48 = vld [vmem:[#allocation7 + $0x418] sm:$0xff]  ;;  %v494_v51 = vld [vmem:[#allocation7 + $0x5c8] sm:$0xff]  ;;  %v2757_v52 = vpack.c.bf16 %v396_v42, %v393_v41  ;;  %v2759_v56 = vpack.c.bf16 %v403_v49, %v400_v45 }
  0xcd   : > { %2740 = vmatprep.subr.bf16.mxu0 %v2739_v59  ;;  %2992 = vmatprep.subr.bf16.mxu1 %v2991_v61  ;;  %v399_v53 = vld [vmem:[#allocation7 + $0x2d0] sm:$0xff]  ;;  %v402_v54 = vld [vmem:[#allocation7 + $0x2e8] sm:$0xff]  ;;  %v3009_v55 = vpack.c.bf16 %v440_v48, %v437_v47  ;;  %v3011_v59 = vpack.c.bf16 %v494_v51, %v491_v50  ;;  %v409_v62 = vld [vmem:[#allocation7 + $0x320] sm:$0xff] }
  0xce   : > { %1128 = vmatprep.mubr.f32.mxu1 %v3959_v27  ;;  %v406_v58 = vld [vmem:[#allocation7 + $0x308] sm:$0xff]  ;;  %v443_v60 = vld [vmem:[#allocation7 + $0x430] sm:$0xff]  ;;  %v497_v63 = vld [vmem:[#allocation7 + $0x5e0] sm:$0xff]  ;;  %v2761_v1 = vpack.c.bf16 %v402_v54, %v399_v53 }
  0xcf   : > { %v446_v61 = vld [vmem:[#allocation7 + $0x448] sm:$0xff]  ;;  %v500_v0 = vld [vmem:[#allocation7 + $0x5f8] sm:$0xff]  ;;  %v405_v2 = vld [vmem:[#allocation7 + $0x300] sm:$0xff]  ;;  %v2763_v5 = vpack.c.bf16 %v409_v62, %v406_v58 }
  0xd0   : > { %2742 = vmatpush1.bf16.msra.mxu0 %v2741_v3  ;;  %2994 = vmatpush3.bf16.msra.mxu1 %v2993_v6  ;;  %v408_v3 = vld [vmem:[#allocation7 + $0x318] sm:$0xff]  ;;  %v3013_v4 = vpack.c.bf16 %v446_v61, %v443_v60  ;;  %v449_v8 = vld [vmem:[#allocation7 + $0x460] sm:$0xff]  ;;  %v415_v10 = vld [vmem:[#allocation7 + $0x350] sm:$0xff] }
  0xd1   : > { %2744 = vmatprep.subr.bf16.mxu0 %v2743_v7  ;;  %2996 = vmatprep.subr.bf16.mxu1 %v2995_v9  ;;  %v412_v6 = vld [vmem:[#allocation7 + $0x338] sm:$0xff]  ;;  %v3015_v7 = vpack.c.bf16 %v500_v0, %v497_v63  ;;  %v551_v11 = vld [vmem:[#allocation7 + $0x790] sm:$0xff]  ;;  %v554_v12 = vld [vmem:[#allocation7 + $0x7a8] sm:$0xff]  ;;  %v2765_v13 = vpack.c.bf16 %v408_v3, %v405_v2 }
  0xd2   : > { %v452_v9 = vld [vmem:[#allocation7 + $0x478] sm:$0xff]  ;;  %v411_v14 = vld [vmem:[#allocation7 + $0x330] sm:$0xff]  ;;  %v2767_v17 = vpack.c.bf16 %v415_v10, %v412_v6  ;;  %v421_v22 = vld [vmem:[#allocation7 + $0x380] sm:$0xff] }
  0xd3   : > { %v3017_v16 = vpack.c.bf16 %v452_v9, %v449_v8  ;;  %v503_v20 = vld [vmem:[#allocation7 + $0x610] sm:$0xff]  ;;  %v557_v23 = vld [vmem:[#allocation7 + $0x7c0] sm:$0xff]  ;;  %v560_v24 = vld [vmem:[#allocation7 + $0x7d8] sm:$0xff] }
  0xd4   : > { %2746 = vmatpush1.bf16.msra.mxu0 %v2745_v15  ;;  %2998 = vmatpush3.bf16.msra.mxu1 %v2997_v18  ;;  %v414_v15 = vld [vmem:[#allocation7 + $0x348] sm:$0xff]  ;;  %v417_v26 = vld [vmem:[#allocation7 + $0x360] sm:$0xff]  ;;  %v3964_v29 = vld [vmem:[%s3934_s13 + $0x10] sm:$0xff]  ;;  %v3023_v33 = vpack.c.bf16 %v560_v24, %v557_v23 }
  0xd5   : > { %2748 = vmatprep.subr.bf16.mxu0 %v2747_v19  ;;  %3000 = vmatprep.subr.bf16.mxu1 %v2999_v21  ;;  %v418_v18 = vld [vmem:[#allocation7 + $0x368] sm:$0xff]  ;;  %v3019_v19 = vpack.c.bf16 %v554_v12, %v551_v11  ;;  %v2769_v25 = vpack.c.bf16 %v414_v15, %v411_v14  ;;  %v512_v35 = vld [vmem:[#allocation7 + $0x658] sm:$0xff]  ;;  %v427_v36 = vld [vmem:[#allocation7 + $0x3b0] sm:$0xff] }
  0xd6   : > { %v506_v21 = vld [vmem:[#allocation7 + $0x628] sm:$0xff]  ;;  %v563_v37 = vld [vmem:[#allocation7 + $0x7f0] sm:$0xff]  ;;  %v433_v48 = vld [vmem:[#allocation7 + $0x3e0] sm:$0xff] }
  0xd7   : > { %v3021_v30 = vpack.c.bf16 %v506_v21, %v503_v20  ;;  %v566_v38 = vld [vmem:[#allocation7 + $0x808] sm:$0xff]  ;;  %v569_v49 = vld [vmem:[#allocation7 + $0x820] sm:$0xff]  ;;  %v439_v60 = vld [vmem:[#allocation7 + $0x410] sm:$0xff] }
  0xd8   : > { %2750 = vmatpush1.bf16.msra.mxu0 %v2749_v28  ;;  %3002 = vmatpush3.bf16.msra.mxu1 %v3001_v31  ;;  %v420_v28 = vld [vmem:[#allocation7 + $0x378] sm:$0xff]  ;;  %v2771_v31 = vpack.c.bf16 %v421_v22, %v418_v18  ;;  %v426_v41 = vld [vmem:[#allocation7 + $0x3a8] sm:$0xff]  ;;  %v3027_v45 = vpack.c.bf16 %v566_v38, %v563_v37  ;;  %v429_v51 = vld [vmem:[#allocation7 + $0x3c0] sm:$0xff] }
  0xd9   : > { %2752 = vmatprep.subr.bf16.mxu0 %v2751_v32  ;;  %3004 = vmatprep.subr.bf16.mxu1 %v3003_v34  ;;  %v424_v32 = vld [vmem:[#allocation7 + $0x398] sm:$0xff]  ;;  %v509_v34 = vld [vmem:[#allocation7 + $0x640] sm:$0xff]  ;;  %v2773_v39 = vpack.c.bf16 %v420_v28, %v417_v26  ;;  %v518_v47 = vld [vmem:[#allocation7 + $0x688] sm:$0xff] }
  0xda   : > { %v3025_v42 = vpack.c.bf16 %v512_v35, %v509_v34  ;;  %v521_v58 = vld [vmem:[#allocation7 + $0x6a0] sm:$0xff]  ;;  %v575_v61 = vld [vmem:[#allocation7 + $0x850] sm:$0xff]  ;;  %v578_v62 = vld [vmem:[#allocation7 + $0x868] sm:$0xff] }
  0xdb   : > { %v435_v0 = vld [vmem:[#allocation7 + $0x3f0] sm:$0xff]  ;;  %v445_v8 = vld [vmem:[#allocation7 + $0x440] sm:$0xff]  ;;  %v584_v10 = vld [vmem:[#allocation7 + $0x898] sm:$0xff] }
  0xdc   : > { %2754 = vmatpush1.bf16.msra.mxu0 %v2753_v40  ;;  %3006 = vmatpush3.bf16.msra.mxu1 %v3005_v43  ;;  %v423_v40 = vld [vmem:[#allocation7 + $0x390] sm:$0xff]  ;;  %v2775_v43 = vpack.c.bf16 %v427_v36, %v424_v32  ;;  %v581_v9 = vld [vmem:[#allocation7 + $0x880] sm:$0xff]  ;;  %v590_v22 = vld [vmem:[#allocation7 + $0x8c8] sm:$0xff] }
  0xdd   : > { %2756 = vmatprep.subr.bf16.mxu0 %v2755_v44  ;;  %3008 = vmatprep.subr.bf16.mxu1 %v3007_v46  ;;  %v430_v44 = vld [vmem:[#allocation7 + $0x3c8] sm:$0xff]  ;;  %v515_v46 = vld [vmem:[#allocation7 + $0x670] sm:$0xff]  ;;  %v2777_v50 = vpack.c.bf16 %v426_v41, %v423_v40  ;;  %v441_v12 = vld [vmem:[#allocation7 + $0x420] sm:$0xff] }
  0xde   : > { %v3029_v53 = vpack.c.bf16 %v518_v47, %v515_v46  ;;  %v2779_v54 = vpack.c.bf16 %v433_v48, %v430_v44  ;;  %v527_v6 = vld [vmem:[#allocation7 + $0x6d0] sm:$0xff]  ;;  %v533_v18 = vld [vmem:[#allocation7 + $0x700] sm:$0xff]  ;;  %v596_v36 = vld [vmem:[#allocation7 + $0x8f8] sm:$0xff] }
  0xdf   : > { %v451_v20 = vld [vmem:[#allocation7 + $0x470] sm:$0xff]  ;;  %v457_v34 = vld [vmem:[#allocation7 + $0x4a0] sm:$0xff]  ;;  %v650_v48 = vld [vmem:[#allocation7 + $0xaa8] sm:$0xff] }
  0xe0   : > { %2758 = vmatpush1.bf16.msra.mxu0 %v2757_v52  ;;  %3010 = vmatpush3.bf16.msra.mxu1 %v3009_v55  ;;  %v432_v52 = vld [vmem:[#allocation7 + $0x3d8] sm:$0xff]  ;;  %v587_v21 = vld [vmem:[#allocation7 + $0x8b0] sm:$0xff]  ;;  %v593_v35 = vld [vmem:[#allocation7 + $0x8e0] sm:$0xff] }
  0xe1   : > { %2760 = vmatprep.subr.bf16.mxu0 %v2759_v56  ;;  %3012 = vmatprep.subr.bf16.mxu1 %v3011_v59  ;;  %v436_v55 = vld [vmem:[#allocation7 + $0x3f8] sm:$0xff]  ;;  %v2781_v63 = vpack.c.bf16 %v432_v52, %v429_v51  ;;  %v447_v24 = vld [vmem:[#allocation7 + $0x450] sm:$0xff]  ;;  %v453_v38 = vld [vmem:[#allocation7 + $0x480] sm:$0xff] }
  0xe2   : > { %v524_v59 = vld [vmem:[#allocation7 + $0x6b8] sm:$0xff]  ;;  %v2783_v3 = vpack.c.bf16 %v439_v60, %v436_v55  ;;  %v539_v32 = vld [vmem:[#allocation7 + $0x730] sm:$0xff]  ;;  %v545_v44 = vld [vmem:[#allocation7 + $0x760] sm:$0xff] }
  0xe3   : > { %v3033_v2 = vpack.c.bf16 %v524_v59, %v521_v58  ;;  %v463_v46 = vld [vmem:[#allocation7 + $0x4d0] sm:$0xff]  ;;  %v469_v58 = vld [vmem:[#allocation7 + $0x500] sm:$0xff]  ;;  %v656_v60 = vld [vmem:[#allocation7 + $0xad8] sm:$0xff] }
  0xe4   : > { %2762 = vmatpush1.bf16.msra.mxu0 %v2761_v1  ;;  %3014 = vmatpush3.bf16.msra.mxu1 %v3013_v4  ;;  %v438_v1 = vld [vmem:[#allocation7 + $0x408] sm:$0xff]  ;;  %v647_v47 = vld [vmem:[#allocation7 + $0xa90] sm:$0xff]  ;;  %v653_v59 = vld [vmem:[#allocation7 + $0xac0] sm:$0xff] }
  0xe5   : > { %2764 = vmatprep.subr.bf16.mxu0 %v2763_v5  ;;  %3016 = vmatprep.subr.bf16.mxu1 %v3015_v7  ;;  %v442_v4 = vld [vmem:[#allocation7 + $0x428] sm:$0xff]  ;;  %v3035_v5 = vpack.c.bf16 %v578_v62, %v575_v61  ;;  %v2785_v11 = vpack.c.bf16 %v438_v1, %v435_v0  ;;  %v599_v55 = vld [vmem:[#allocation7 + $0x910] sm:$0xff]  ;;  %v465_v62 = vld [vmem:[#allocation7 + $0x4e0] sm:$0xff] }
  0xe6   : > { %v530_v7 = vld [vmem:[#allocation7 + $0x6e8] sm:$0xff]  ;;  %v2787_v15 = vpack.c.bf16 %v445_v8, %v442_v4  ;;  %v3973_v0 = vld [vmem:[%s3934_s13 + $0x20] sm:$0xff]  ;;  %v3055_v4 = vpack.c.bf16 %v656_v60, %v653_v59  ;;  %v659_v8 = vld [vmem:[#allocation7 + $0xaf0] sm:$0xff] }
  0xe7   : > { %775 = vmatmul.mubr.f32.vlgmr.msra.gmra.mrb[0].mxu0 %v3955_v57  ;;  %v3969_v57 = vld [vmem:[%s3934_s13 + $0x28] sm:$0xff]  ;;  %v3037_v14 = vpack.c.bf16 %v530_v7, %v527_v6  ;;  %v608_v6 = vld [vmem:[#allocation7 + $0x958] sm:$0xff]  ;;  %v475_v7 = vld [vmem:[#allocation7 + $0x530] sm:$0xff] }
  0xe8   : > { %2766 = vmatpush1.bf16.msra.mxu0 %v2765_v13  ;;  %3018 = vmatpush3.bf16.msra.mxu1 %v3017_v16  ;;  %v444_v13 = vld [vmem:[#allocation7 + $0x438] sm:$0xff]  ;;  %v683_v59 = vld [vmem:[#allocation7 + $0xbb0] sm:$0xff]  ;;  %v686_v60 = vld [vmem:[#allocation7 + $0xbc8] sm:$0xff] }
  0xe9   : > { %2768 = vmatprep.subr.bf16.mxu0 %v2767_v17  ;;  %3020 = vmatprep.subr.bf16.mxu1 %v3019_v19  ;;  %v448_v16 = vld [vmem:[#allocation7 + $0x458] sm:$0xff]  ;;  %v3039_v17 = vpack.c.bf16 %v584_v10, %v581_v9  ;;  %v2789_v23 = vpack.c.bf16 %v444_v13, %v441_v12  ;;  %v662_v9 = vld [vmem:[#allocation7 + $0xb08] sm:$0xff]  ;;  %v471_v12 = vld [vmem:[#allocation7 + $0x510] sm:$0xff] }
  0xea   : > { %845 = vmatprep.mubr.f32.mxu0 %v3959_v27  ;;  %v572_v27 = vld [vmem:[#allocation7 + $0x838] sm:$0xff]  ;;  %v2791_v28 = vpack.c.bf16 %v451_v20, %v448_v16  ;;  %v474_v13 = vld [vmem:[#allocation7 + $0x528] sm:$0xff]  ;;  %v481_v20 = vld [vmem:[#allocation7 + $0x560] sm:$0xff] }
  0xeb   : > { %1129 = vmatmul.mubr.f32.vlgmr.msra.gmra.mrb[2].mxu1 %v3964_v29  ;;  %v3031_v56 = vpack.c.bf16 %v572_v27, %v569_v49  ;;  %v536_v19 = vld [vmem:[#allocation7 + $0x718] sm:$0xff]  ;;  %v459_v27 = vld [vmem:[#allocation7 + $0x4b0] sm:$0xff]  ;;  %v478_v16 = vld [vmem:[#allocation7 + $0x548] sm:$0xff] }
  0xec   : > { %2770 = vmatpush1.bf16.msra.mxu0 %v2769_v25  ;;  %3022 = vmatpush3.bf16.msra.mxu1 %v3021_v30  ;;  %v450_v25 = vld [vmem:[#allocation7 + $0x468] sm:$0xff]  ;;  %v3041_v26 = vpack.c.bf16 %v536_v19, %v533_v18  ;;  %v3977_v10 = vld [vmem:[%s3934_s13 + $0x38] sm:$0xff]  ;;  %v611_v18 = vld [vmem:[#allocation7 + $0x970] sm:$0xff] }
  0xed   : > { %2772 = vmatprep.subr.bf16.mxu0 %v2771_v31  ;;  %3024 = vmatprep.subr.bf16.mxu1 %v3023_v33  ;;  %v454_v30 = vld [vmem:[#allocation7 + $0x488] sm:$0xff]  ;;  %v3043_v31 = vpack.c.bf16 %v590_v22, %v587_v21  ;;  %v2793_v37 = vpack.c.bf16 %v450_v25, %v447_v24  ;;  %v665_v21 = vld [vmem:[#allocation7 + $0xb20] sm:$0xff]  ;;  %v668_v22 = vld [vmem:[#allocation7 + $0xb38] sm:$0xff] }
  0xee   : > { %1198 = vmatprep.mubr.f32.mxu1 %v3969_v57  ;;  %v542_v33 = vld [vmem:[#allocation7 + $0x748] sm:$0xff]  ;;  %v2795_v41 = vpack.c.bf16 %v457_v34, %v454_v30  ;;  %v477_v24 = vld [vmem:[#allocation7 + $0x540] sm:$0xff]  ;;  %v480_v25 = vld [vmem:[#allocation7 + $0x558] sm:$0xff] }
  0xef   : > { %v3045_v40 = vpack.c.bf16 %v542_v33, %v539_v32  ;;  %v614_v19 = vld [vmem:[#allocation7 + $0x988] sm:$0xff]  ;;  %v484_v30 = vld [vmem:[#allocation7 + $0x578] sm:$0xff]  ;;  %v617_v32 = vld [vmem:[#allocation7 + $0x9a0] sm:$0xff] }
  0xf0   : > { %2774 = vmatpush1.bf16.msra.mxu0 %v2773_v39  ;;  %3026 = vmatpush3.bf16.msra.mxu1 %v3025_v42  ;;  %v456_v39 = vld [vmem:[#allocation7 + $0x498] sm:$0xff]  ;;  %v487_v34 = vld [vmem:[#allocation7 + $0x590] sm:$0xff] }
  0xf1   : > { %2776 = vmatprep.subr.bf16.mxu0 %v2775_v43  ;;  %3028 = vmatprep.subr.bf16.mxu1 %v3027_v45  ;;  %v460_v42 = vld [vmem:[#allocation7 + $0x4b8] sm:$0xff]  ;;  %v3047_v43 = vpack.c.bf16 %v596_v36, %v593_v35  ;;  %v2797_v49 = vpack.c.bf16 %v456_v39, %v453_v38  ;;  %v671_v35 = vld [vmem:[#allocation7 + $0xb50] sm:$0xff]  ;;  %v674_v36 = vld [vmem:[#allocation7 + $0xb68] sm:$0xff] }
  0xf2   : > { %v548_v45 = vld [vmem:[#allocation7 + $0x778] sm:$0xff]  ;;  %v2799_v52 = vpack.c.bf16 %v463_v46, %v460_v42  ;;  %v483_v38 = vld [vmem:[#allocation7 + $0x570] sm:$0xff]  ;;  %v486_v39 = vld [vmem:[#allocation7 + $0x588] sm:$0xff] }
  0xf3   : > { %v3049_v51 = vpack.c.bf16 %v548_v45, %v545_v44  ;;  %v620_v33 = vld [vmem:[#allocation7 + $0x9b8] sm:$0xff]  ;;  %v490_v42 = vld [vmem:[#allocation7 + $0x5a8] sm:$0xff]  ;;  %v623_v44 = vld [vmem:[#allocation7 + $0x9d0] sm:$0xff] }
  0xf4   : > { %2778 = vmatpush1.bf16.msra.mxu0 %v2777_v50  ;;  %3030 = vmatpush3.bf16.msra.mxu1 %v3029_v53  ;;  %v462_v50 = vld [vmem:[#allocation7 + $0x4c8] sm:$0xff]  ;;  %v493_v46 = vld [vmem:[#allocation7 + $0x5c0] sm:$0xff] }
  0xf5   : > { %2780 = vmatprep.subr.bf16.mxu0 %v2779_v54  ;;  %3032 = vmatprep.subr.bf16.mxu1 %v3031_v56  ;;  %v466_v53 = vld [vmem:[#allocation7 + $0x4e8] sm:$0xff]  ;;  %v3051_v54 = vpack.c.bf16 %v650_v48, %v647_v47  ;;  %v2801_v61 = vpack.c.bf16 %v462_v50, %v459_v27  ;;  %v677_v47 = vld [vmem:[#allocation7 + $0xb80] sm:$0xff]  ;;  %v680_v48 = vld [vmem:[#allocation7 + $0xb98] sm:$0xff] }
  0xf6   : > { %v602_v56 = vld [vmem:[#allocation7 + $0x928] sm:$0xff]  ;;  %v489_v27 = vld [vmem:[#allocation7 + $0x5a0] sm:$0xff]  ;;  %v492_v50 = vld [vmem:[#allocation7 + $0x5b8] sm:$0xff] }
  0xf7   : > { %v3053_v1 = vpack.c.bf16 %v602_v56, %v599_v55  ;;  %v626_v45 = vld [vmem:[#allocation7 + $0x9e8] sm:$0xff]  ;;  %v629_v55 = vld [vmem:[#allocation7 + $0xa00] sm:$0xff]  ;;  %v632_v56 = vld [vmem:[#allocation7 + $0xa18] sm:$0xff] }
  0xf8   : > { %2782 = vmatpush1.bf16.msra.mxu0 %v2781_v63  ;;  %3034 = vmatpush3.bf16.msra.mxu1 %v3033_v2  ;;  %v468_v63 = vld [vmem:[#allocation7 + $0x4f8] sm:$0xff]  ;;  %v2803_v2 = vpack.c.bf16 %v469_v58, %v466_v53  ;;  %v499_v58 = vld [vmem:[#allocation7 + $0x5f0] sm:$0xff] }
  0xf9   : > { %2784 = vmatprep.subr.bf16.mxu0 %v2783_v3  ;;  %3036 = vmatprep.subr.bf16.mxu1 %v3035_v5  ;;  %v472_v3 = vld [vmem:[#allocation7 + $0x518] sm:$0xff]  ;;  %v605_v5 = vld [vmem:[#allocation7 + $0x940] sm:$0xff] }
  0xfa   : > { %v496_v53 = vld [vmem:[#allocation7 + $0x5d8] sm:$0xff] }
  0xfc   : > { %2786 = vmatpush1.bf16.msra.mxu0 %v2785_v11  ;;  %3038 = vmatpush3.bf16.msra.mxu1 %v3037_v14  ;;  %v2805_v11 = vpack.c.bf16 %v468_v63, %v465_v62  ;;  %v3057_v14 = vpack.c.bf16 %v608_v6, %v605_v5  ;;  %v495_v62 = vld [vmem:[#allocation7 + $0x5d0] sm:$0xff]  ;;  %v498_v63 = vld [vmem:[#allocation7 + $0x5e8] sm:$0xff] }
  0xfd   : > { %2788 = vmatprep.subr.bf16.mxu0 %v2787_v15  ;;  %3040 = vmatprep.subr.bf16.mxu1 %v3039_v17  ;;  %v2807_v15 = vpack.c.bf16 %v475_v7, %v472_v3  ;;  %v3059_v17 = vpack.c.bf16 %v662_v9, %v659_v8  ;;  %v502_v3 = vld [vmem:[#allocation7 + $0x608] sm:$0xff]  ;;  %v635_v5 = vld [vmem:[#allocation7 + $0xa30] sm:$0xff]  ;;  %v505_v7 = vld [vmem:[#allocation7 + $0x620] sm:$0xff] }
  0xfe   : > { %v638_v6 = vld [vmem:[#allocation7 + $0xa48] sm:$0xff]  ;;  %v689_v8 = vld [vmem:[#allocation7 + $0xbe0] sm:$0xff]  ;;  %v692_v9 = vld [vmem:[#allocation7 + $0xbf8] sm:$0xff] }
 0x100   : > { %2790 = vmatpush1.bf16.msra.mxu0 %v2789_v23  ;;  %3042 = vmatpush3.bf16.msra.mxu1 %v3041_v26  ;;  %v2809_v23 = vpack.c.bf16 %v474_v13, %v471_v12  ;;  %v3061_v26 = vpack.c.bf16 %v614_v19, %v611_v18  ;;  %v501_v12 = vld [vmem:[#allocation7 + $0x600] sm:$0xff]  ;;  %v3077_v13 = vpack.c.bf16 %v638_v6, %v635_v5  ;;  %v644_v18 = vld [vmem:[#allocation7 + $0xa78] sm:$0xff]  ;;  %v1309_v6 = vld [vmem:[#allocation10 + $0xa8] sm:$0xff] }
 0x101   : > { %2792 = vmatprep.subr.bf16.mxu0 %v2791_v28  ;;  %3044 = vmatprep.subr.bf16.mxu1 %v3043_v31  ;;  %v2811_v28 = vpack.c.bf16 %v481_v20, %v478_v16  ;;  %v3063_v31 = vpack.c.bf16 %v668_v22, %v665_v21  ;;  %v3079_v16 = vpack.c.bf16 %v692_v9, %v689_v8  ;;  %v508_v19 = vld [vmem:[#allocation7 + $0x638] sm:$0xff]  ;;  %v511_v20 = vld [vmem:[#allocation7 + $0x650] sm:$0xff]  ;;  %v1292_v22 = vld [vmem:[#allocation10 + $0x20] sm:$0xff] }
 0x102   : > { %v1289_v21 = vld [vmem:[#allocation10 + $0x8] sm:$0xff]  ;;  %v1306_v5 = vld [vmem:[#allocation10 + $0x90] sm:$0xff]  ;;  %v1316_v9 = vld [vmem:[#allocation10 + $0xe0] sm:$0xff] }
 0x103   : > { %v1313_v8 = vld [vmem:[#allocation10 + $0xc8] sm:$0xff] }
 0x104   : > { %2794 = vmatpush1.bf16.msra.mxu0 %v2793_v37  ;;  %3046 = vmatpush3.bf16.msra.mxu1 %v3045_v40  ;;  %v2813_v37 = vpack.c.bf16 %v480_v25, %v477_v24  ;;  %v3065_v40 = vpack.c.bf16 %v620_v33, %v617_v32  ;;  %v507_v24 = vld [vmem:[#allocation7 + $0x630] sm:$0xff]  ;;  %v510_v25 = vld [vmem:[#allocation7 + $0x648] sm:$0xff]  ;;  %v1291_v32 = vld [vmem:[#allocation10 + $0x18] sm:$0xff] }
 0x105   : > { %2796 = vmatprep.subr.bf16.mxu0 %v2795_v41  ;;  %3048 = vmatprep.subr.bf16.mxu1 %v3047_v43  ;;  %v2815_v41 = vpack.c.bf16 %v487_v34, %v484_v30  ;;  %v3067_v43 = vpack.c.bf16 %v674_v36, %v671_v35  ;;  %v514_v30 = vld [vmem:[#allocation7 + $0x668] sm:$0xff]  ;;  %v517_v33 = vld [vmem:[#allocation7 + $0x680] sm:$0xff]  ;;  %v3980_v34 = vpack.c.bf16 %v1292_v22, %v1289_v21  ;;  %v1298_v36 = vld [vmem:[#allocation10 + $0x50] sm:$0xff] }
 0x106   : > { %v1295_v35 = vld [vmem:[#allocation10 + $0x38] sm:$0xff]  ;;  %v1322_v22 = vld [vmem:[#allocation10 + $0x110] sm:$0xff] }
 0x107   : > { %v1319_v21 = vld [vmem:[#allocation10 + $0xf8] sm:$0xff] }
 0x108   : > { %2798 = vmatpush1.bf16.msra.mxu0 %v2797_v49  ;;  %3050 = vmatpush3.bf16.msra.mxu1 %v3049_v51  ;;  %v2817_v49 = vpack.c.bf16 %v486_v39, %v483_v38  ;;  %v3069_v51 = vpack.c.bf16 %v626_v45, %v623_v44  ;;  %v513_v38 = vld [vmem:[#allocation7 + $0x660] sm:$0xff]  ;;  %v516_v39 = vld [vmem:[#allocation7 + $0x678] sm:$0xff]  ;;  %v3989_v44 = vpack.c.bf16 %v1298_v36, %v1295_v35  ;;  %v547_v35 = vld [vmem:[#allocation7 + $0x770] sm:$0xff] }
 0x109   : > { %2800 = vmatprep.subr.bf16.mxu0 %v2799_v52  ;;  %3052 = vmatprep.subr.bf16.mxu1 %v3051_v54  ;;  %v2819_v52 = vpack.c.bf16 %v493_v46, %v490_v42  ;;  %v3071_v54 = vpack.c.bf16 %v680_v48, %v677_v47  ;;  %v2835_v42 = vpack.c.bf16 %v517_v33, %v514_v30  ;;  %v1294_v45 = vld [vmem:[#allocation10 + $0x30] sm:$0xff]  ;;  %v1297_v46 = vld [vmem:[#allocation10 + $0x48] sm:$0xff]  ;;  %v1304_v48 = vld [vmem:[#allocation10 + $0x80] sm:$0xff] }
 0x10a   : > { %v523_v47 = vld [vmem:[#allocation7 + $0x6b0] sm:$0xff]  ;;  %v544_v30 = vld [vmem:[#allocation7 + $0x758] sm:$0xff] }
 0x10b   : > { %1199 = vmatmul.mubr.f32.vlgmr.msra.gmra.mrb[4].mxu1 %v3973_v0  ;;  %v1321_v33 = vld [vmem:[#allocation10 + $0x108] sm:$0xff] }
 0x10c   : > { %2802 = vmatpush1.bf16.msra.mxu0 %v2801_v61  ;;  %3054 = vmatpush3.bf16.msra.mxu1 %v3053_v1  ;;  %v2821_v61 = vpack.c.bf16 %v492_v50, %v489_v27  ;;  %v3073_v1 = vpack.c.bf16 %v632_v56, %v629_v55  ;;  %v519_v27 = vld [vmem:[#allocation7 + $0x690] sm:$0xff]  ;;  %v522_v50 = vld [vmem:[#allocation7 + $0x6a8] sm:$0xff]  ;;  %v1303_v55 = vld [vmem:[#allocation10 + $0x78] sm:$0xff] }
 0x10d   : > { %2804 = vmatprep.subr.bf16.mxu0 %v2803_v2  ;;  %3056 = vmatprep.subr.bf16.mxu1 %v3055_v4  ;;  %v2823_v2 = vpack.c.bf16 %v499_v58, %v496_v53  ;;  %v3075_v4 = vpack.c.bf16 %v686_v60, %v683_v59  ;;  %v529_v56 = vld [vmem:[#allocation7 + $0x6e0] sm:$0xff]  ;;  %v1310_v59 = vld [vmem:[#allocation10 + $0xb0] sm:$0xff]  ;;  %v3676_v60 = vmov 0.0   ;;  %v1325_v36 = vld [vmem:[#allocation10 + $0x128] sm:$0xff] }
 0x10e   : > { %1268 = vmatprep.mubr.f32.mxu1 %v3977_v10  ;;  %v1307_v58 = vld [vmem:[#allocation10 + $0x98] sm:$0xff] }
 0x110   : > { %2806 = vmatpush1.bf16.msra.mxu0 %v2805_v11  ;;  %3058 = vmatpush3.bf16.msra.mxu1 %v3057_v14  ;;  %v2825_v11 = vpack.c.bf16 %v498_v63, %v495_v62  ;;  %v2827_v14 = vpack.c.bf16 %v505_v7, %v502_v3  ;;  %v525_v62 = vld [vmem:[#allocation7 + $0x6c0] sm:$0xff]  ;;  %v528_v63 = vld [vmem:[#allocation7 + $0x6d8] sm:$0xff]  ;;  %v535_v7 = vld [vmem:[#allocation7 + $0x710] sm:$0xff] }
 0x111   : > { %2808 = vmatprep.subr.bf16.mxu0 %v2807_v15  ;;  %3060 = vmatprep.subr.bf16.mxu1 %v3059_v17  ;;  %v504_v15 = vld [vmem:[#allocation7 + $0x618] sm:$0xff]  ;;  %v641_v17 = vld [vmem:[#allocation7 + $0xa60] sm:$0xff] }
 0x112   : > { %v532_v3 = vld [vmem:[#allocation7 + $0x6f8] sm:$0xff] }
 0x114   : > { %2810 = vmatpush1.bf16.msra.mxu0 %v2809_v23  ;;  %3062 = vmatpush3.bf16.msra.mxu1 %v3061_v26  ;;  %v2829_v23 = vpack.c.bf16 %v504_v15, %v501_v12  ;;  %v3081_v26 = vpack.c.bf16 %v644_v18, %v641_v17  ;;  %v531_v12 = vld [vmem:[#allocation7 + $0x6f0] sm:$0xff]  ;;  %v2847_v15 = vpack.c.bf16 %v535_v7, %v532_v3  ;;  %v1312_v18 = vld [vmem:[#allocation10 + $0xc0] sm:$0xff] }
 0x115   : > { %2812 = vmatprep.subr.bf16.mxu0 %v2811_v28  ;;  %3064 = vmatprep.subr.bf16.mxu1 %v3063_v31  ;;  %v2831_v28 = vpack.c.bf16 %v511_v20, %v508_v19  ;;  %v1288_v31 = vld [vmem:[#allocation10] sm:$0xff]  ;;  %v4010_v17 = vpack.c.bf16 %v1316_v9, %v1313_v8  ;;  %v1315_v19 = vld [vmem:[#allocation10 + $0xd8] sm:$0xff]  ;;  %v555_v3 = vld [vmem:[#allocation7 + $0x7b0] sm:$0xff] }
 0x116   : > { %v541_v20 = vld [vmem:[#allocation7 + $0x740] sm:$0xff]  ;;  %v558_v7 = vld [vmem:[#allocation7 + $0x7c8] sm:$0xff]  ;;  %v1290_v8 = vld [vmem:[#allocation10 + $0x10] sm:$0xff] }
 0x117   : > { %v1293_v9 = vld [vmem:[#allocation10 + $0x28] sm:$0xff] }
 0x118   : > { %2814 = vmatpush1.bf16.msra.mxu0 %v2813_v37  ;;  %3066 = vmatpush3.bf16.msra.mxu1 %v3065_v40  ;;  %v2833_v37 = vpack.c.bf16 %v510_v25, %v507_v24  ;;  %v3984_v40 = vld [vmem:[%s3934_s13 + $0x30] sm:$0xff]  ;;  %v537_v24 = vld [vmem:[#allocation7 + $0x720] sm:$0xff]  ;;  %v540_v25 = vld [vmem:[#allocation7 + $0x738] sm:$0xff] }
 0x119   : > { %2816 = vmatprep.subr.bf16.mxu0 %v2815_v41  ;;  %3068 = vmatprep.subr.bf16.mxu1 %v3067_v43  ;;  %v3986_v41 = vpack.c.bf16 %v1291_v32, %v1288_v31  ;;  %v520_v43 = vld [vmem:[#allocation7 + $0x698] sm:$0xff]  ;;  %v4016_v31 = vpack.c.bf16 %v1322_v22, %v1319_v21  ;;  %v3677_v21 = vmov 0.0|0.0   ;;  %v1296_v22 = vld [vmem:[#allocation10 + $0x40] sm:$0xff] }
 0x11a   : > { %v1318_v32 = vld [vmem:[#allocation10 + $0xf0] sm:$0xff] }
 0x11c   : > { %2818 = vmatpush1.bf16.msra.mxu0 %v2817_v49  ;;  %3070 = vmatpush3.bf16.msra.mxu1 %v3069_v51  ;;  %v2837_v49 = vpack.c.bf16 %v516_v39, %v513_v38  ;;  %v3994_v51 = vpack.c.bf16 %v1297_v46, %v1294_v45  ;;  %v2853_v38 = vpack.c.bf16 %v540_v25, %v537_v24  ;;  %v543_v39 = vld [vmem:[#allocation7 + $0x750] sm:$0xff]  ;;  %v550_v46 = vld [vmem:[#allocation7 + $0x788] sm:$0xff]  ;;  %v568_v24 = vld [vmem:[#allocation7 + $0x818] sm:$0xff] }
 0x11d   : > { %2820 = vmatprep.subr.bf16.mxu0 %v2819_v52  ;;  %3072 = vmatprep.subr.bf16.mxu1 %v3071_v54  ;;  %v526_v52 = vld [vmem:[#allocation7 + $0x6c8] sm:$0xff]  ;;  %v2855_v45 = vpack.c.bf16 %v547_v35, %v544_v30  ;;  %v571_v25 = vld [vmem:[#allocation7 + $0x830] sm:$0xff] }
 0x11e   : > { %v1300_v54 = vld [vmem:[#allocation10 + $0x60] sm:$0xff]  ;;  %v567_v30 = vld [vmem:[#allocation7 + $0x810] sm:$0xff] }
 0x11f   : > { %v570_v35 = vld [vmem:[#allocation7 + $0x828] sm:$0xff] }
 0x120   : > { %2822 = vmatpush1.bf16.msra.mxu0 %v2821_v61  ;;  %3074 = vmatpush3.bf16.msra.mxu1 %v3073_v1  ;;  %v2841_v61 = vpack.c.bf16 %v522_v50, %v519_v27  ;;  %v4001_v1 = vpack.c.bf16 %v1303_v55, %v1300_v54  ;;  %v1331_v27 = vld [vmem:[#allocation10 + $0x158] sm:$0xff]  ;;  %v1334_v50 = vld [vmem:[#allocation10 + $0x170] sm:$0xff] }
 0x121   : > { %2824 = vmatprep.subr.bf16.mxu0 %v2823_v2  ;;  %3076 = vmatprep.subr.bf16.mxu1 %v3075_v4  ;;  %v2843_v2 = vpack.c.bf16 %v529_v56, %v526_v52  ;;  %v4004_v4 = vpack.c.bf16 %v1310_v59, %v1307_v58  ;;  %v549_v52 = vld [vmem:[#allocation7 + $0x780] sm:$0xff]  ;;  %v552_v56 = vld [vmem:[#allocation7 + $0x798] sm:$0xff]  ;;  %v4028_v58 = vpack.c.bf16 %v1334_v50, %v1331_v27 }
 0x122   : > { %v1330_v59 = vld [vmem:[#allocation10 + $0x150] sm:$0xff]  ;;  %v1311_v27 = vld [vmem:[#allocation10 + $0xb8] sm:$0xff] }
 0x123   : > { %v580_v50 = vld [vmem:[#allocation7 + $0x878] sm:$0xff] }
 0x124   : > { %2826 = vmatpush1.bf16.msra.mxu0 %v2825_v11  ;;  %3078 = vmatpush3.bf16.msra.mxu1 %v3077_v13  ;;  %v2845_v11 = vpack.c.bf16 %v528_v63, %v525_v62  ;;  %v534_v13 = vld [vmem:[#allocation7 + $0x708] sm:$0xff]  ;;  %v556_v62 = vld [vmem:[#allocation7 + $0x7b8] sm:$0xff]  ;;  %v559_v63 = vld [vmem:[#allocation7 + $0x7d0] sm:$0xff] }
 0x125   : > { %2828 = vmatprep.subr.bf16.mxu0 %v2827_v14  ;;  %3080 = vmatprep.subr.bf16.mxu1 %v3079_v16  ;;  %v4007_v14 = vpack.c.bf16 %v1309_v6, %v1306_v5  ;;  %v538_v16 = vld [vmem:[#allocation7 + $0x728] sm:$0xff]  ;;  %v2863_v6 = vpack.c.bf16 %v559_v63, %v556_v62  ;;  %v1314_v62 = vld [vmem:[#allocation10 + $0xd0] sm:$0xff] }
 0x126   : > { %v1317_v63 = vld [vmem:[#allocation10 + $0xe8] sm:$0xff] }
 0x127   : > { %846 = vmatmul.mubr.f32.vlgmr.msra.gmra.mrb[0].mxu0 %v3964_v29  ;;  %v1301_v29 = vld [vmem:[#allocation10 + $0x68] sm:$0xff] }
 0x128   : > { %2830 = vmatpush1.bf16.msra.mxu0 %v2829_v23  ;;  %3082 = vmatpush3.bf16.msra.mxu1 %v3081_v26  ;;  %v3997_v53 = vpack.c.bf16 %v1304_v48, %v1301_v29  ;;  %v2849_v23 = vpack.c.bf16 %v534_v13, %v531_v12  ;;  %v4013_v26 = vpack.c.bf16 %v1315_v19, %v1312_v18  ;;  %v1324_v29 = vld [vmem:[#allocation10 + $0x120] sm:$0xff]  ;;  %v1327_v48 = vld [vmem:[#allocation10 + $0x138] sm:$0xff] }
 0x129   : > { %2832 = vmatprep.subr.bf16.mxu0 %v2831_v28  ;;  %916 = vmatprep.mubr.f32.mxu0 %v3969_v57  ;;  %v2839_v57 = vpack.c.bf16 %v523_v47, %v520_v43  ;;  %v2851_v28 = vpack.c.bf16 %v541_v20, %v538_v16  ;;  %v4019_v43 = vpack.c.bf16 %v1321_v33, %v1318_v32  ;;  %v565_v12 = vld [vmem:[#allocation7 + $0x800] sm:$0xff]  ;;  %v564_v20 = vld [vmem:[#allocation7 + $0x7f8] sm:$0xff] }
 0x12a   : > { %3084 = vmatprep.subr.bf16.mxu1 %v3980_v34  ;;  %v4025_v54 = vpack.c.bf16 %v1327_v48, %v1324_v29  ;;  %v2865_v13 = vpack.c.bf16 %v558_v7, %v555_v3  ;;  %v4035_v16 = vld [vmem:[#allocation2] sm:$0x3]  ;;  %v4037_v18 = vpack.c.bf16 %v1293_v9, %v1290_v8  ;;  %v2871_v33 = vpack.c.bf16 %v571_v25, %v568_v24  ;;  %v576_v48 = vld [vmem:[#allocation7 + $0x858] sm:$0xff]  ;;  %v594_v25 = vld [vmem:[#allocation7 + $0x8e8] sm:$0xff] }
 0x12b   : > { %1269 = vmatmul.mubr.f32.vlgmr.msra.gmra.mrb[6].mxu1 %v3984_v40  ;;  %v589_v3 = vld [vmem:[#allocation7 + $0x8c0] sm:$0xff]  ;;  %v4056_v8 = vpack.c.bf16 %v1317_v63, %v1314_v62 }
 0x12c   : > { %2834 = vmatpush1.bf16.msra.mxu0 %v2833_v37  ;;  %3086 = vmatpush1.bf16.msra.mxu1 %v3986_v41  ;;  %v1328_v37 = vld [vmem:[#allocation10 + $0x140] sm:$0xff] }
 0x12d   : > { %2836 = vmatprep.subr.bf16.mxu0 %v2835_v42  ;;  %3088 = vmatprep.subr.bf16.mxu1 %v3989_v44  ;;  %v546_v42 = vld [vmem:[#allocation7 + $0x768] sm:$0xff]  ;;  %v4022_v47 = vpack.c.bf16 %v1328_v37, %v1325_v36  ;;  %v1302_v36 = vld [vmem:[#allocation10 + $0x70] sm:$0xff]  ;;  %v585_v7 = vld [vmem:[#allocation7 + $0x8a0] sm:$0xff] }
 0x12e   : > { %1400 = vmatprep.mubr.f32.mxu1 %v3676_v60  ;;  %v1305_v37 = vld [vmem:[#allocation10 + $0x88] sm:$0xff] }
 0x130   : > { %2838 = vmatpush1.bf16.msra.mxu0 %v2837_v49  ;;  %3090 = vmatpush1.bf16.msra.mxu1 %v3994_v51  ;;  %v553_v49 = vld [vmem:[#allocation7 + $0x7a0] sm:$0xff] }
 0x131   : > { %2840 = vmatprep.subr.bf16.mxu0 %v2839_v57  ;;  %3092 = vmatprep.subr.bf16.mxu1 %v3997_v53  ;;  %v2857_v57 = vpack.c.bf16 %v546_v42, %v543_v39  ;;  %v2859_v55 = vpack.c.bf16 %v553_v49, %v550_v46  ;;  %v577_v39 = vld [vmem:[#allocation7 + $0x860] sm:$0xff]  ;;  %v2873_v42 = vpack.c.bf16 %v570_v35, %v567_v30  ;;  %v1329_v30 = vld [vmem:[#allocation10 + $0x148] sm:$0xff] }
 0x132   : > { %v4048_v46 = vpack.c.bf16 %v1305_v37, %v1302_v36  ;;  %v1308_v49 = vld [vmem:[#allocation10 + $0xa0] sm:$0xff] }
 0x133   : > { %v601_v35 = vld [vmem:[#allocation7 + $0x920] sm:$0xff] }
 0x134   : > { %2842 = vmatpush1.bf16.msra.mxu0 %v2841_v61  ;;  %3094 = vmatpush1.bf16.msra.mxu1 %v4001_v1  ;;  %v1333_v61 = vld [vmem:[#allocation10 + $0x168] sm:$0xff] }
 0x135   : > { %2844 = vmatprep.subr.bf16.mxu0 %v2843_v2  ;;  %3096 = vmatprep.subr.bf16.mxu1 %v4004_v4  ;;  %v2861_v2 = vpack.c.bf16 %v552_v56, %v549_v52  ;;  %v4031_v5 = vpack.c.bf16 %v1333_v61, %v1330_v59  ;;  %v4052_v56 = vpack.c.bf16 %v1311_v27, %v1308_v49  ;;  %v582_v61 = vld [vmem:[#allocation7 + $0x888] sm:$0xff]  ;;  %v1335_v49 = vld [vmem:[#allocation10 + $0x178] sm:$0xff] }
 0x138   : > { %2846 = vmatpush1.bf16.msra.mxu0 %v2845_v11  ;;  %3098 = vmatpush1.bf16.msra.mxu1 %v4007_v14  ;;  %v562_v11 = vld [vmem:[#allocation7 + $0x7e8] sm:$0xff] }
 0x139   : > { %2848 = vmatprep.subr.bf16.mxu0 %v2847_v15  ;;  %3100 = vmatprep.subr.bf16.mxu1 %v4010_v17  ;;  %v561_v15 = vld [vmem:[#allocation7 + $0x7e0] sm:$0xff]  ;;  %v2867_v19 = vpack.c.bf16 %v565_v12, %v562_v11  ;;  %v588_v11 = vld [vmem:[#allocation7 + $0x8b8] sm:$0xff] }
 0x13a   : > { %v1320_v12 = vld [vmem:[#allocation10 + $0x100] sm:$0xff] }
 0x13c   : > { %2850 = vmatpush1.bf16.msra.mxu0 %v2849_v23  ;;  %3102 = vmatpush1.bf16.msra.mxu1 %v4013_v26  ;;  %v1299_v23 = vld [vmem:[#allocation10 + $0x58] sm:$0xff] }
 0x13d   : > { %2852 = vmatprep.subr.bf16.mxu0 %v2851_v28  ;;  %3104 = vmatprep.subr.bf16.mxu1 %v4016_v31  ;;  %v2869_v28 = vpack.c.bf16 %v564_v20, %v561_v15  ;;  %v4042_v32 = vpack.c.bf16 %v1299_v23, %v1296_v22  ;;  %v592_v15 = vld [vmem:[#allocation7 + $0x8d8] sm:$0xff]  ;;  %v2885_v20 = vpack.c.bf16 %v588_v11, %v585_v7  ;;  %v591_v22 = vld [vmem:[#allocation7 + $0x8d0] sm:$0xff] }
 0x13e   : > { %v2889_v36 = vpack.c.bf16 %v594_v25, %v591_v22  ;;  %v619_v7 = vld [vmem:[#allocation7 + $0x9b0] sm:$0xff]  ;;  %v624_v22 = vld [vmem:[#allocation7 + $0x9d8] sm:$0xff] }
 0x13f   : > { %v615_v11 = vld [vmem:[#allocation7 + $0x990] sm:$0xff] }
 0x140   : > { %2854 = vmatpush1.bf16.msra.mxu0 %v2853_v38  ;;  %3106 = vmatpush1.bf16.msra.mxu1 %v4019_v43  ;;  %v574_v38 = vld [vmem:[#allocation7 + $0x848] sm:$0xff]  ;;  %v631_v25 = vld [vmem:[#allocation7 + $0xa10] sm:$0xff] }
 0x141   : > { %2856 = vmatprep.subr.bf16.mxu0 %v2855_v45  ;;  %3108 = vmatprep.subr.bf16.mxu1 %v4022_v47  ;;  %v573_v45 = vld [vmem:[#allocation7 + $0x840] sm:$0xff]  ;;  %v2875_v29 = vpack.c.bf16 %v577_v39, %v574_v38 }
 0x142   : > { %v2877_v52 = vpack.c.bf16 %v576_v48, %v573_v45  ;;  %v597_v39 = vld [vmem:[#allocation7 + $0x900] sm:$0xff]  ;;  %v604_v45 = vld [vmem:[#allocation7 + $0x938] sm:$0xff] }
 0x143   : > { %v1332_v48 = vld [vmem:[#allocation10 + $0x160] sm:$0xff] }
 0x144   : > { %2858 = vmatpush1.bf16.msra.mxu0 %v2857_v57  ;;  %3110 = vmatpush1.bf16.msra.mxu1 %v4025_v54  ;;  %v583_v57 = vld [vmem:[#allocation7 + $0x890] sm:$0xff] }
 0x145   : > { %2860 = vmatprep.subr.bf16.mxu0 %v2859_v55  ;;  %3112 = vmatprep.subr.bf16.mxu1 %v4028_v58  ;;  %v579_v55 = vld [vmem:[#allocation7 + $0x870] sm:$0xff]  ;;  %v2879_v59 = vpack.c.bf16 %v583_v57, %v580_v50 }
 0x146   : > { %v603_v57 = vld [vmem:[#allocation7 + $0x930] sm:$0xff] }
 0x148   : > { %2862 = vmatpush1.bf16.msra.mxu0 %v2861_v2  ;;  %3114 = vmatpush1.bf16.msra.mxu1 %v4031_v5  ;;  %v586_v2 = vld [vmem:[#allocation7 + $0x8a8] sm:$0xff] }
 0x149   : > { %2864 = vmatprep.subr.bf16.mxu0 %v2863_v6  ;;  %3115 = vmatprep.subr.bf16.mxu1 %v3677_v21  ;;  %v2881_v6 = vpack.c.bf16 %v582_v61, %v579_v55  ;;  %v2883_v9 = vpack.c.bf16 %v589_v3, %v586_v2  ;;  %v4069_v55 = vpack.c.bf16 %v1335_v49, %v1332_v48  ;;  %v613_v61 = vld [vmem:[#allocation7 + $0x980] sm:$0xff]  ;;  %v612_v3 = vld [vmem:[#allocation7 + $0x978] sm:$0xff]  ;;  %v643_v49 = vld [vmem:[#allocation7 + $0xa70] sm:$0xff] }
 0x14a   : > { %v609_v2 = vld [vmem:[#allocation7 + $0x960] sm:$0xff]  ;;  %v640_v48 = vld [vmem:[#allocation7 + $0xa58] sm:$0xff] }
 0x14b   : > { %1401 = vmatmul.mubr.f32.vlgmr.msra.gmra.mrb[8].mxu1 %v4035_v16 }
 0x14c   : > { %2866 = vmatpush1.bf16.msra.mxu0 %v2865_v13  ;;  %3117 = vmatpush3.bf16.msra.mxu1 %v4037_v18  ;;  %v1323_v13 = vld [vmem:[#allocation10 + $0x118] sm:$0xff] }
 0x14d   : > { %2868 = vmatprep.subr.bf16.mxu0 %v2867_v19  ;;  %3118 = vmatprep.subr.bf16.mxu1 %v3677_v21  ;;  %v595_v19 = vld [vmem:[#allocation7 + $0x8f0] sm:$0xff]  ;;  %v4060_v23 = vpack.c.bf16 %v1323_v13, %v1320_v12  ;;  %v618_v12 = vld [vmem:[#allocation7 + $0x9a8] sm:$0xff]  ;;  %v625_v13 = vld [vmem:[#allocation7 + $0x9e0] sm:$0xff] }
 0x14e   : > { %2591 = vmatprep.mubr.msk.f32.mxu1 %vm3678_vm0, %v3676_v60  ;;  %v2887_v24 = vpack.c.bf16 %v595_v19, %v592_v15  ;;  %v2905_v15 = vpack.c.bf16 %v618_v12, %v615_v11  ;;  %v651_v11 = vld [vmem:[#allocation7 + $0xab0] sm:$0xff]  ;;  %v654_v12 = vld [vmem:[#allocation7 + $0xac8] sm:$0xff] }
 0x150   : > { %2870 = vmatpush1.bf16.msra.mxu0 %v2869_v28  ;;  %3120 = vmatpush3.bf16.msra.mxu1 %v4042_v32  ;;  %v1326_v28 = vld [vmem:[#allocation10 + $0x130] sm:$0xff] }
 0x151   : > { %2872 = vmatprep.subr.bf16.mxu0 %v2871_v33  ;;  %3121 = vmatprep.subr.bf16.mxu1 %v3677_v21  ;;  %v598_v33 = vld [vmem:[#allocation7 + $0x908] sm:$0xff]  ;;  %v4064_v37 = vpack.c.bf16 %v1329_v30, %v1326_v28 }
 0x152   : > { %v2891_v38 = vpack.c.bf16 %v601_v35, %v598_v33  ;;  %v627_v33 = vld [vmem:[#allocation7 + $0x9f0] sm:$0xff]  ;;  %v630_v35 = vld [vmem:[#allocation7 + $0xa08] sm:$0xff] }
 0x154   : > { %2874 = vmatpush1.bf16.msra.mxu0 %v2873_v42  ;;  %3123 = vmatpush3.bf16.msra.mxu1 %v4048_v46  ;;  %v600_v42 = vld [vmem:[#allocation7 + $0x918] sm:$0xff] }
 0x155   : > { %2876 = vmatprep.subr.bf16.mxu0 %v2875_v29  ;;  %3124 = vmatprep.subr.bf16.mxu1 %v3677_v21  ;;  %v607_v29 = vld [vmem:[#allocation7 + $0x950] sm:$0xff]  ;;  %v2893_v27 = vpack.c.bf16 %v600_v42, %v597_v39  ;;  %v2913_v39 = vpack.c.bf16 %v630_v35, %v627_v33  ;;  %v666_v35 = vld [vmem:[#allocation7 + $0xb28] sm:$0xff] }
 0x156   : > { %v2895_v50 = vpack.c.bf16 %v607_v29, %v604_v45  ;;  %v633_v45 = vld [vmem:[#allocation7 + $0xa20] sm:$0xff]  ;;  %v636_v29 = vld [vmem:[#allocation7 + $0xa38] sm:$0xff]  ;;  %v663_v33 = vld [vmem:[#allocation7 + $0xb10] sm:$0xff] }
 0x158   : > { %2878 = vmatpush1.bf16.msra.mxu0 %v2877_v52  ;;  %3126 = vmatpush3.bf16.msra.mxu1 %v4052_v56  ;;  %v606_v52 = vld [vmem:[#allocation7 + $0x948] sm:$0xff] }
 0x159   : > { %2880 = vmatprep.subr.bf16.mxu0 %v2879_v59  ;;  %3127 = vmatprep.subr.bf16.mxu1 %v3677_v21  ;;  %v610_v59 = vld [vmem:[#allocation7 + $0x968] sm:$0xff]  ;;  %v2897_v62 = vpack.c.bf16 %v606_v52, %v603_v57  ;;  %v639_v57 = vld [vmem:[#allocation7 + $0xa50] sm:$0xff] }
 0x15a   : > { %v2899_v63 = vpack.c.bf16 %v613_v61, %v610_v59  ;;  %v642_v52 = vld [vmem:[#allocation7 + $0xa68] sm:$0xff]  ;;  %v649_v61 = vld [vmem:[#allocation7 + $0xaa0] sm:$0xff] }
 0x15b   : > { %v646_v59 = vld [vmem:[#allocation7 + $0xa88] sm:$0xff] }
 0x15c   : > { %2882 = vmatpush1.bf16.msra.mxu0 %v2881_v6  ;;  %3129 = vmatpush3.bf16.msra.mxu1 %v4056_v8  ;;  %v616_v6 = vld [vmem:[#allocation7 + $0x998] sm:$0xff] }
 0x15d   : > { %2884 = vmatprep.subr.bf16.mxu0 %v2883_v9  ;;  %3130 = vmatprep.subr.bf16.mxu1 %v3677_v21  ;;  %v2901_v9 = vpack.c.bf16 %v612_v3, %v609_v2  ;;  %v645_v2 = vld [vmem:[#allocation7 + $0xa80] sm:$0xff]  ;;  %v648_v3 = vld [vmem:[#allocation7 + $0xa98] sm:$0xff] }
 0x160   : > { %2886 = vmatpush1.bf16.msra.mxu0 %v2885_v20  ;;  %3132 = vmatpush3.bf16.msra.mxu1 %v4060_v23  ;;  %v621_v20 = vld [vmem:[#allocation7 + $0x9c0] sm:$0xff] }
 0x161   : > { %2888 = vmatprep.subr.bf16.mxu0 %v2887_v24  ;;  %3133 = vmatprep.subr.bf16.mxu1 %v3677_v21  ;;  %v628_v24 = vld [vmem:[#allocation7 + $0x9f8] sm:$0xff]  ;;  %v2909_v28 = vpack.c.bf16 %v624_v22, %v621_v20  ;;  %v657_v20 = vld [vmem:[#allocation7 + $0xae0] sm:$0xff] }
 0x162   : > { %v2911_v30 = vpack.c.bf16 %v631_v25, %v628_v24  ;;  %v660_v22 = vld [vmem:[#allocation7 + $0xaf8] sm:$0xff]  ;;  %v667_v25 = vld [vmem:[#allocation7 + $0xb30] sm:$0xff] }
 0x163   : > { %v664_v24 = vld [vmem:[#allocation7 + $0xb18] sm:$0xff] }
 0x164   : > { %2890 = vmatpush1.bf16.msra.mxu0 %v2889_v36  ;;  %3135 = vmatpush3.bf16.msra.mxu1 %v4064_v37  ;;  %v634_v36 = vld [vmem:[#allocation7 + $0xa28] sm:$0xff] }
 0x165   : > { %2892 = vmatprep.subr.bf16.mxu0 %v2891_v38  ;;  %3136 = vmatprep.subr.bf16.mxu1 %v3677_v21  ;;  %v637_v38 = vld [vmem:[#allocation7 + $0xa40] sm:$0xff] }
 0x166   : > { %v2915_v42 = vpack.c.bf16 %v637_v38, %v634_v36  ;;  %v670_v36 = vld [vmem:[#allocation7 + $0xb48] sm:$0xff]  ;;  %v673_v38 = vld [vmem:[#allocation7 + $0xb60] sm:$0xff] }
 0x167   : > { %917 = vmatmul.mubr.f32.vlgmr.msra.gmra.mrb[0].mxu0 %v3973_v0  ;;  %v2903_v0 = vpack.c.bf16 %v619_v7, %v616_v6  ;;  %v652_v6 = vld [vmem:[#allocation7 + $0xab8] sm:$0xff]  ;;  %v655_v7 = vld [vmem:[#allocation7 + $0xad0] sm:$0xff] }
 0x168   : > { %2894 = vmatpush1.bf16.msra.mxu0 %v2893_v27  ;;  %987 = vmatprep.mubr.f32.mxu0 %v3977_v10  ;;  %v622_v10 = vld [vmem:[#allocation7 + $0x9c8] sm:$0xff]  ;;  %v2917_v27 = vpack.c.bf16 %v636_v29, %v633_v45  ;;  %v669_v45 = vld [vmem:[#allocation7 + $0xb40] sm:$0xff]  ;;  %v672_v29 = vld [vmem:[#allocation7 + $0xb58] sm:$0xff] }
 0x169   : > { %2896 = vmatprep.subr.bf16.mxu0 %v2895_v50  ;;  %3138 = vmatpush3.bf16.msra.mxu1 %v4069_v55  ;;  %v2907_v19 = vpack.c.bf16 %v625_v13, %v622_v10  ;;  %v2919_v50 = vpack.c.bf16 %v643_v49, %v640_v48  ;;  %v658_v10 = vld [vmem:[#allocation7 + $0xae8] sm:$0xff]  ;;  %v661_v13 = vld [vmem:[#allocation7 + $0xb00] sm:$0xff]  ;;  %v676_v48 = vld [vmem:[#allocation7 + $0xb78] sm:$0xff] }
 0x16a   : > { %3140 = vmatprep.subr.bf16.mxu1 %v3980_v34  ;;  %v679_v49 = vld [vmem:[#allocation7 + $0xb90] sm:$0xff] }
 0x16c   : > { %2898 = vmatpush1.bf16.msra.mxu0 %v2897_v62  ;;  %2592 = vmatmul.mubr.f32.vlgmr.msra.gmra.mrb[10].mxu1 %v4035_v16  ;;  %v2921_v62 = vpack.c.bf16 %v642_v52, %v639_v57  ;;  %v675_v57 = vld [vmem:[#allocation7 + $0xb70] sm:$0xff]  ;;  %v678_v52 = vld [vmem:[#allocation7 + $0xb88] sm:$0xff] }
 0x16d   : > { %2900 = vmatprep.subr.bf16.mxu0 %v2899_v63  ;;  %3142 = vmatpush1.bf16.msra.mxu1 %v3986_v41  ;;  %v2923_v63 = vpack.c.bf16 %v649_v61, %v646_v59  ;;  %v682_v59 = vld [vmem:[#allocation7 + $0xba8] sm:$0xff]  ;;  %v685_v61 = vld [vmem:[#allocation7 + $0xbc0] sm:$0xff] }
 0x16e   : > { %3144 = vmatprep.subr.bf16.mxu1 %v3989_v44  ;;  %1615 = vmatprep.mubr.f32.mxu1 %v3676_v60 }
 0x170   : > { %2902 = vmatpush1.bf16.msra.mxu0 %v2901_v9  ;;  %v2925_v9 = vpack.c.bf16 %v648_v3, %v645_v2  ;;  %v681_v2 = vld [vmem:[#allocation7 + $0xba0] sm:$0xff]  ;;  %v684_v3 = vld [vmem:[#allocation7 + $0xbb8] sm:$0xff] }
 0x171   : > { %2904 = vmatprep.subr.bf16.mxu0 %v2903_v0  ;;  %3146 = vmatpush1.bf16.msra.mxu1 %v3994_v51  ;;  %v2927_v0 = vpack.c.bf16 %v655_v7, %v652_v6  ;;  %v688_v6 = vld [vmem:[#allocation7 + $0xbd8] sm:$0xff]  ;;  %v691_v7 = vld [vmem:[#allocation7 + $0xbf0] sm:$0xff] }
 0x172   : > { %3148 = vmatprep.subr.bf16.mxu1 %v3997_v53 }
 0x174   : > { %2906 = vmatpush1.bf16.msra.mxu0 %v2905_v15  ;;  %v2929_v15 = vpack.c.bf16 %v654_v12, %v651_v11  ;;  %v687_v11 = vld [vmem:[#allocation7 + $0xbd0] sm:$0xff]  ;;  %v690_v12 = vld [vmem:[#allocation7 + $0xbe8] sm:$0xff] }
 0x175   : > { %2908 = vmatprep.subr.bf16.mxu0 %v2907_v19  ;;  %3150 = vmatpush1.bf16.msra.mxu1 %v4001_v1  ;;  %v2931_v19 = vpack.c.bf16 %v661_v13, %v658_v10 }
 0x176   : > { %3152 = vmatprep.subr.bf16.mxu1 %v4004_v4 }
 0x178   : > { %2910 = vmatpush1.bf16.msra.mxu0 %v2909_v28  ;;  %v2933_v28 = vpack.c.bf16 %v660_v22, %v657_v20  ;;  %v695_v20 = vlaneseq }
 0x179   : > { %2912 = vmatprep.subr.bf16.mxu0 %v2911_v30  ;;  %3154 = vmatpush1.bf16.msra.mxu1 %v4007_v14  ;;  %v2935_v30 = vpack.c.bf16 %v667_v25, %v664_v24  ;;  %v693_v24 = vld [vmem:[#allocation9] sm:$0x7] }
 0x17a   : > { %3156 = vmatprep.subr.bf16.mxu1 %v4010_v17  ;;  %v696_v22 = vshrl.u32 %v695_v20, 7 }
 0x17c   : > { %2914 = vmatpush1.bf16.msra.mxu0 %v2913_v39  ;;  %v2937_v39 = vpack.c.bf16 %v666_v35, %v663_v33 }
 0x17d   : > { %2916 = vmatprep.subr.bf16.mxu0 %v2915_v42  ;;  %3158 = vmatpush1.bf16.msra.mxu1 %v4013_v26  ;;  %v2939_v42 = vpack.c.bf16 %v673_v38, %v670_v36 }
 0x17e   : > { %3160 = vmatprep.subr.bf16.mxu1 %v4016_v31 }
 0x180   : > { %2918 = vmatpush1.bf16.msra.mxu0 %v2917_v27  ;;  %v2941_v27 = vpack.c.bf16 %v672_v29, %v669_v45 }
 0x181   : > { %2920 = vmatprep.subr.bf16.mxu0 %v2919_v50  ;;  %3162 = vmatpush1.bf16.msra.mxu1 %v4019_v43  ;;  %v2943_v50 = vpack.c.bf16 %v679_v49, %v676_v48 }
 0x182   : > { %3164 = vmatprep.subr.bf16.mxu1 %v4022_v47 }
 0x184   : > { %2922 = vmatpush1.bf16.msra.mxu0 %v2921_v62  ;;  %v2945_v62 = vpack.c.bf16 %v678_v52, %v675_v57 }
 0x185   : > { %2924 = vmatprep.subr.bf16.mxu0 %v2923_v63  ;;  %3166 = vmatpush1.bf16.msra.mxu1 %v4025_v54  ;;  %v2947_v63 = vpack.c.bf16 %v685_v61, %v682_v59  ;;  %v697_v61 = vsub.s32 0, %v696_v22 }
 0x186   : > { %3168 = vmatprep.subr.bf16.mxu1 %v4028_v58 }
 0x188   : > { %2926 = vmatpush1.bf16.msra.mxu0 %v2925_v9  ;;  %v2949_v9 = vpack.c.bf16 %v684_v3, %v681_v2 }
 0x189   : > { %2928 = vmatprep.subr.bf16.mxu0 %v2927_v0  ;;  %3170 = vmatpush1.bf16.msra.mxu1 %v4031_v5  ;;  %v2951_v0 = vpack.c.bf16 %v691_v7, %v688_v6 }
 0x18a   : > { %3171 = vmatprep.subr.bf16.mxu1 %v3677_v21 }
 0x18c   : > { %2930 = vmatpush1.bf16.msra.mxu0 %v2929_v15  ;;  %v2953_v15 = vpack.c.bf16 %v690_v12, %v687_v11 }
 0x18d   : > { %2932 = vmatprep.subr.bf16.mxu0 %v2931_v19 }
 0x190   : > { %2934 = vmatpush1.bf16.msra.mxu0 %v2933_v28 }
 0x191   : > { %2936 = vmatprep.subr.bf16.mxu0 %v2935_v30 }
 0x194   : > { %2938 = vmatpush1.bf16.msra.mxu0 %v2937_v39 }
 0x195   : > { %2940 = vmatprep.subr.bf16.mxu0 %v2939_v42 }
 0x198   : > { %2942 = vmatpush1.bf16.msra.mxu0 %v2941_v27 }
 0x199   : > { %2944 = vmatprep.subr.bf16.mxu0 %v2943_v50 }
 0x19c   : > { %2946 = vmatpush1.bf16.msra.mxu0 %v2945_v62  ;;  %v701_v62 = vsub.s32 1, %v696_v22 }
 0x19d   : > { %2948 = vmatprep.subr.bf16.mxu0 %v2947_v63  ;;  %v698_v63 = vrot.slane %v693_v24, %v697_v61 }
 0x19e   : > { %v2383_v10 = vpop.f32.mrb[0].mxu1  ;;  %v702_v2 = vrot.slane %v693_v24, %v701_v62 }
 0x19f   : > { %v2384_v13 = vpop.f32.mrb[1].mxu1 }
 0x1a0   : > { %2950 = vmatpush1.bf16.msra.mxu0 %v2949_v9  ;;  %v2385_v19 = vadd.f32 %v2384_v13, %v2383_v10 }
 0x1a1   : > { %2952 = vmatprep.subr.bf16.mxu0 %v2951_v0 }
 0x1a4   : > { %2954 = vmatpush1.bf16.msra.mxu0 %v2953_v15 }
 0x1a5   : > { %3196 = vmatprep.subr.bf16.mxu0 %v3980_v34 }
 0x1a7   : > { %988 = vmatmul.mubr.f32.vlgmr.msra.gmra.mrb[0].mxu0 %v3984_v40  ;;  %v705_v40 = vsub.s32 2, %v696_v22  ;;  %v4112_v22 = vld [vmem:[#allocation12] ss:$0 sm:$0xff] }
 0x1a8   : > { %3198 = vmatpush1.bf16.msra.mxu0 %v3986_v41  ;;  %1846 = vmatprep.mubr.f32.mxu0 %v3676_v60 }
 0x1a9   : > { %3200 = vmatprep.subr.bf16.mxu0 %v3989_v44  ;;  %v706_v25 = vrot.slane %v693_v24, %v705_v40 }
 0x1ab   : > { %v1061_v28 = vadd.f32 %v2385_v19, %v706_v25 }
 0x1ac   : > { %3202 = vmatpush1.bf16.msra.mxu0 %v3994_v51 }
 0x1ad   : > { %3204 = vmatprep.subr.bf16.mxu0 %v3997_v53 }
 0x1b0   : > { %3206 = vmatpush1.bf16.msra.mxu0 %v4001_v1 }
 0x1b1   : > { %3208 = vmatprep.subr.bf16.mxu0 %v4004_v4 }
 0x1b4   : > { %3210 = vmatpush1.bf16.msra.mxu0 %v4007_v14 }
 0x1b5   : > { %3212 = vmatprep.subr.bf16.mxu0 %v4010_v17 }
 0x1b8   : > { %3214 = vmatpush1.bf16.msra.mxu0 %v4013_v26 }
 0x1b9   : > { %3216 = vmatprep.subr.bf16.mxu0 %v4016_v31 }
 0x1bc   : > { %3218 = vmatpush1.bf16.msra.mxu0 %v4019_v43 }
 0x1bd   : > { %3220 = vmatprep.subr.bf16.mxu0 %v4022_v47 }
 0x1be   : > { %v2418_v30 = vpop.f32.mrb[2].mxu1 }
 0x1bf   : > { %v2419_v33 = vpop.f32.mrb[3].mxu1 }
 0x1c0   : > { %v2420_v35 = vadd.f32 %v2419_v33, %v2418_v30  ;;  %3222 = vmatpush1.bf16.msra.mxu0 %v4025_v54 }
 0x1c1   : > { %3224 = vmatprep.subr.bf16.mxu0 %v4028_v58 }
 0x1c2   : > { %v1131_v36 = vadd.f32 %v2420_v35, %v1061_v28 }
 0x1c4   : > { %3226 = vmatpush1.bf16.msra.mxu0 %v4031_v5 }
 0x1c5   : > { %3252 = vmatprep.subr.bf16.mxu0 %v3980_v34 }
 0x1de   : > { %v2453_v38 = vpop.f32.mrb[4].mxu1 }
 0x1df   : > { %v2454_v39 = vpop.f32.mrb[5].mxu1 }
 0x1e0   : > { %v2455_v42 = vadd.f32 %v2454_v39, %v2453_v38 }
 0x1e2   : > { %v1201_v45 = vadd.f32 %v2455_v42, %v1131_v36 }
 0x1fe   : > { %v2488_v29 = vpop.f32.mrb[6].mxu1 }
 0x1ff   : > { %v2489_v48 = vpop.f32.mrb[7].mxu1 }
 0x200   : > { %v2490_v49 = vadd.f32 %v2489_v48, %v2488_v29 }
 0x202   : > { %v1271_v27 = vadd.f32 %v2490_v49, %v1201_v45 }
 0x204   : > { %1276 = vst [vmem:[#allocation3 + $0x10] sm:$0xff] %v1271_v27 }
 0x20b   : > { %v1287_v30 = vld [vmem:[#allocation3 + $0x10] sm:$0x3] }
 0x21e   : > { %v1402_v50 = vpop.f32.mrb[8].mxu1 }
 0x21f   : > { %v1404_v57 = vpop.f32.mrb[9].mxu1 }
 0x23f   : > { %v1473_v52 = vpop.f32.mrb[10].mxu1 }
 0x240   : > { %v2593_v59 = vpop.f32.mrb[11].mxu1  ;;  %v1491_v24 = vadd.f32 %v4112_v22, %v1473_v52 }
 0x27a   : > { %v989_v3 = vpop.f32.mrb[0].mxu0 }
 0x27b   : > { %v3307_v6 = vadd.f32 %v989_v3, %v698_v63  ;;  %v991_v34 = vpop.f32.mrb[1].mxu0 }
 0x27c   : > { %v3308_v7 = vadd.f32 %v991_v34, %v702_v2 }
 0x27d   : > { %1274 = vst [vmem:[#allocation3] sm:$0xff] %v3307_v6 }
 0x27e   : > { %1275 = vst [vmem:[#allocation3 + $0x8] sm:$0xff] %v3308_v7 }
 0x284   : > { %v1285_v9 = vld [vmem:[#allocation3] sm:$0x3]  ;;  %v1500_v49 = vld [vmem:[#allocation3] sm:$0xc] }
 0x285   : > { %v1477_v0 = vadd.f32 %v1402_v50, %v1285_v9  ;;  %v1286_v11 = vld [vmem:[#allocation3 + $0x8] sm:$0x3] }
 0x286   : > { %v1484_v10 = vadd.f32 %v1404_v57, %v1286_v11  ;;  %v1501_v57 = vld [vmem:[#allocation3 + $0x8] sm:$0xc] }
 0x287   : > { %v2333_v12 = vmul.f32 -1.442695, %v1477_v0 }
 0x288   : > { %v2334_v13 = vmul.f32 -1.442695, %v1484_v10 }
 0x289   : > { %3410 = vpow2.f32 %v2333_v12 }
 0x28a   : > { %3412 = vpow2.f32 %v2334_v13 }
 0x293   : > { %v3411_v15 = vpop.eup %3410 }
 0x294   : > { %v1481_v19 = vadd.f32 1.0, %v3411_v15  ;;  %v3413_v20 = vpop.eup %3412  ;;  %v1502_v15 = vld [vmem:[#allocation3 + $0x10] sm:$0xc] }
 0x295   : > { %v1488_v40 = vadd.f32 1.0, %v3413_v20 }
 0x296   : > { %3414 = vrcp.f32 %v1481_v19 }
 0x297   : > { %3416 = vrcp.f32 %v1488_v40 }
 0x2a0   : > { %v3415_v25 = vpop.eup %3414 }
 0x2a1   : > { %v1492_v28 = vmul.f32 %v3415_v25, %v1491_v24  ;;  %v3417_v35 = vpop.eup %3416 }
 0x2a2   : > { %v1495_v36 = vsub.f32 1.0, %v3417_v35  ;;  %v1497_v42 = vmul.f32 %v3417_v35, %v4035_v16 }
 0x2a3   : > { %v1493_v33 = vadd.f32 %v1492_v28, %v1287_v30 }
 0x2a5   : > { %3418 = vtanh.f32 %v1493_v33 }
 0x2af   : > { %v3419_v38 = vpop.eup %3418 }
 0x2b0   : > { %v1496_v39 = vmul.f32 %v3419_v38, %v1495_v36 }
 0x2b2   : > { %v1498_v45 = vadd.f32 %v1497_v42, %v1496_v39 }
 0x2b4   : > { %1499 = vst [vmem:[%s3949_s26] sm:$0x3] %v1498_v45  ;;  %1616 = vmatmul.mubr.f32.vlgmr.msra.gmra.mrb[12].mxu1 %v1498_v45  ;;  %v1722_v6 = vrot.slane %v1498_v45, 6 }
 0x2b5   : > { %3173 = vmatpush3.bf16.msra.mxu1 %v4037_v18  ;;  %2626 = vmatprep.mubr.msk.f32.mxu1 %vm3678_vm0, %v3676_v60 }
 0x2b6   : > { %3174 = vmatprep.subr.bf16.mxu1 %v3677_v21 }
 0x2b9   : > { %3176 = vmatpush3.bf16.msra.mxu1 %v4042_v32 }
 0x2ba   : > { %3177 = vmatprep.subr.bf16.mxu1 %v3677_v21 }
 0x2bd   : > { %3179 = vmatpush3.bf16.msra.mxu1 %v4048_v46 }
 0x2be   : > { %3180 = vmatprep.subr.bf16.mxu1 %v3677_v21 }
 0x2c1   : > { %3182 = vmatpush3.bf16.msra.mxu1 %v4052_v56 }
 0x2c2   : > { %3183 = vmatprep.subr.bf16.mxu1 %v3677_v21 }
 0x2c5   : > { %3185 = vmatpush3.bf16.msra.mxu1 %v4056_v8 }
 0x2c6   : > { %3186 = vmatprep.subr.bf16.mxu1 %v3677_v21 }
 0x2c9   : > { %3188 = vmatpush3.bf16.msra.mxu1 %v4060_v23 }
 0x2ca   : > { %3189 = vmatprep.subr.bf16.mxu1 %v3677_v21 }
 0x2cd   : > { %3191 = vmatpush3.bf16.msra.mxu1 %v4064_v37 }
 0x2ce   : > { %3192 = vmatprep.subr.bf16.mxu1 %v3677_v21 }
 0x2d1   : > { %3194 = vmatpush3.bf16.msra.mxu1 %v4069_v55 }
 0x2d2   : > { %3227 = vmatprep.subr.bf16.mxu1 %v3677_v21 }
 0x2d4   : > { %2627 = vmatmul.mubr.f32.vlgmr.msra.gmra.mrb[14].mxu1 %v1498_v45 }
 0x2d5   : > { %3229 = vmatpush3.bf16.msra.mxu1 %v4037_v18  ;;  %2661 = vmatprep.mubr.msk.f32.mxu1 %vm3678_vm0, %v3676_v60 }
 0x2d6   : > { %3230 = vmatprep.subr.bf16.mxu1 %v3677_v21 }
 0x2d9   : > { %3232 = vmatpush3.bf16.msra.mxu1 %v4042_v32 }
 0x2da   : > { %3233 = vmatprep.subr.bf16.mxu1 %v3677_v21 }
 0x2dd   : > { %3235 = vmatpush3.bf16.msra.mxu1 %v4048_v46 }
 0x2de   : > { %3236 = vmatprep.subr.bf16.mxu1 %v3677_v21 }
 0x2e1   : > { %3238 = vmatpush3.bf16.msra.mxu1 %v4052_v56 }
 0x2e2   : > { %3239 = vmatprep.subr.bf16.mxu1 %v3677_v21 }
 0x2e5   : > { %3241 = vmatpush3.bf16.msra.mxu1 %v4056_v8 }
 0x2e6   : > { %3242 = vmatprep.subr.bf16.mxu1 %v3677_v21 }
 0x2e9   : > { %3244 = vmatpush3.bf16.msra.mxu1 %v4060_v23 }
 0x2ea   : > { %3245 = vmatprep.subr.bf16.mxu1 %v3677_v21 }
 0x2ed   : > { %3247 = vmatpush3.bf16.msra.mxu1 %v4064_v37 }
 0x2ee   : > { %3248 = vmatprep.subr.bf16.mxu1 %v3677_v21 }
 0x2f1   : > { %3250 = vmatpush3.bf16.msra.mxu1 %v4069_v55 }
 0x2f2   : > { %3283 = vmatprep.subr.bf16.mxu1 %v3677_v21 }
 0x387   : > { %v1617_v16 = vpop.f32.mrb[12].mxu1 }
 0x388   : > { %v1693_v29 = vrot.slane %v1617_v16, 6  ;;  %v1619_v48 = vpop.f32.mrb[13].mxu1 }
 0x389   : > { %v1703_v27 = vrot.slane %v1619_v48, 6  ;;  %v1958_v48 = vld [vmem:[#allocation3] sm:$0xc0] }
 0x38a   : > { %v1695_v50 = vadd.f32 %v1693_v29, %v1500_v49 }
 0x38b   : > { %v1705_v52 = vadd.f32 %v1703_v27, %v1501_v57 }
 0x38c   : > { %v2335_v59 = vmul.f32 -1.442695, %v1695_v50  ;;  %v1959_v50 = vld [vmem:[#allocation3 + $0x8] sm:$0xc0] }
 0x38d   : > { %v2336_v61 = vmul.f32 -1.442695, %v1705_v52 }
 0x38f   : > { %3420 = vpow2.f32 %v2336_v61 }
 0x390   : > { %3422 = vpow2.f32 %v2335_v59 }
 0x399   : > { %v3421_v62 = vpop.eup %3420 }
 0x39a   : > { %v3423_v63 = vpop.eup %3422  ;;  %v1709_v2 = vadd.f32 1.0, %v3421_v62 }
 0x39b   : > { %v1699_v3 = vadd.f32 1.0, %v3423_v63 }
 0x39c   : > { %3424 = vrcp.f32 %v1709_v2 }
 0x39d   : > { %3426 = vrcp.f32 %v1699_v3 }
 0x3a6   : > { %v3425_v34 = vpop.eup %3424 }
 0x3a7   : > { %v1688_v7 = vpop.f32.mrb[14].mxu1  ;;  %v1724_v9 = vmul.f32 %v3425_v34, %v1722_v6  ;;  %v3427_v10 = vpop.eup %3426  ;;  %v1719_v20 = vsub.f32 1.0, %v3425_v34 }
 0x3a8   : > { %v1712_v0 = vadd.f32 %v4112_v22, %v1688_v7  ;;  %v2628_v11 = vpop.f32.mrb[15].mxu1 }
 0x3a9   : > { %v1960_v11 = vld [vmem:[#allocation3 + $0x10] sm:$0xc0] }
 0x3aa   : > { %v1714_v12 = vrot.slane %v1712_v0, 6 }
 0x3ac   : > { %v1716_v13 = vmul.f32 %v3427_v10, %v1714_v12 }
 0x3ae   : > { %v1717_v19 = vadd.f32 %v1716_v13, %v1502_v15 }
 0x3b0   : > { %3428 = vtanh.f32 %v1717_v19 }
 0x3ba   : > { %v3429_v40 = vpop.eup %3428 }
 0x3bb   : > { %v1720_v24 = vmul.f32 %v3429_v40, %v1719_v20 }
 0x3bd   : > { %v4154_v25 = vadd.f32 %v1724_v9, %v1720_v24 }
 0x3bf   : > { %2337 = vst [vmem:[%s3949_s26] sm:$0xc] %v4154_v25  ;;  %v1780_v28 = vrot.slane %v4154_v25, 2 }
 0x3c1   : > { %1847 = vmatmul.mubr.f32.vlgmr.msra.gmra.mrb[2].mxu0 %v1780_v28  ;;  %2662 = vmatmul.mubr.f32.vlgmr.msra.gmra.mrb[16].mxu1 %v1780_v28 }
 0x3c2   : > { %3254 = vmatpush1.bf16.msra.mxu0 %v3986_v41  ;;  %3285 = vmatpush3.bf16.msra.mxu1 %v4037_v18 }
 0x3c3   : > { %3256 = vmatprep.subr.bf16.mxu0 %v3989_v44  ;;  %3286 = vmatprep.subr.bf16.mxu1 %v3677_v21 }
 0x3c4   : > { %2076 = vmatprep.mubr.f32.mxu0 %v3676_v60  ;;  %2696 = vmatprep.mubr.msk.f32.mxu1 %vm3678_vm0, %v3676_v60 }
 0x3c6   : > { %3258 = vmatpush1.bf16.msra.mxu0 %v3994_v51  ;;  %3288 = vmatpush3.bf16.msra.mxu1 %v4042_v32 }
 0x3c7   : > { %3260 = vmatprep.subr.bf16.mxu0 %v3997_v53  ;;  %3289 = vmatprep.subr.bf16.mxu1 %v3677_v21 }
 0x3ca   : > { %3262 = vmatpush1.bf16.msra.mxu0 %v4001_v1  ;;  %3291 = vmatpush3.bf16.msra.mxu1 %v4048_v46  ;;  %v1728_v1 = vld [vmem:[#allocation3] sm:$0x30]  ;;  %v1952_v46 = vrot.slane %v4154_v25, 6 }
 0x3cb   : > { %3264 = vmatprep.subr.bf16.mxu0 %v4004_v4  ;;  %3292 = vmatprep.subr.bf16.mxu1 %v3677_v21 }
 0x3ce   : > { %3266 = vmatpush1.bf16.msra.mxu0 %v4007_v14  ;;  %3294 = vmatpush3.bf16.msra.mxu1 %v4052_v56 }
 0x3cf   : > { %3268 = vmatprep.subr.bf16.mxu0 %v4010_v17  ;;  %3295 = vmatprep.subr.bf16.mxu1 %v3677_v21  ;;  %v1729_v17 = vld [vmem:[#allocation3 + $0x8] sm:$0x30] }
 0x3d2   : > { %3270 = vmatpush1.bf16.msra.mxu0 %v4013_v26  ;;  %3297 = vmatpush3.bf16.msra.mxu1 %v4056_v8 }
 0x3d3   : > { %3272 = vmatprep.subr.bf16.mxu0 %v4016_v31  ;;  %3298 = vmatprep.subr.bf16.mxu1 %v3677_v21 }
 0x3d6   : > { %3274 = vmatpush1.bf16.msra.mxu0 %v4019_v43  ;;  %3300 = vmatpush3.bf16.msra.mxu1 %v4060_v23  ;;  %v1730_v23 = vld [vmem:[#allocation3 + $0x10] sm:$0x30] }
 0x3d7   : > { %3276 = vmatprep.subr.bf16.mxu0 %v4022_v47  ;;  %3301 = vmatprep.subr.bf16.mxu1 %v3677_v21 }
 0x3da   : > { %3278 = vmatpush1.bf16.msra.mxu0 %v4025_v54  ;;  %3303 = vmatpush3.bf16.msra.mxu1 %v4064_v37 }
 0x3db   : > { %3280 = vmatprep.subr.bf16.mxu0 %v4028_v58  ;;  %3304 = vmatprep.subr.bf16.mxu1 %v3677_v21 }
 0x3de   : > { %3282 = vmatpush1.bf16.msra.mxu0 %v4031_v5  ;;  %3306 = vmatpush3.bf16.msra.mxu1 %v4069_v55 }
 0x494   : > { %v1848_v41 = vpop.f32.mrb[2].mxu0  ;;  %v1919_v44 = vpop.f32.mrb[16].mxu1 }
 0x495   : > { %v1924_v51 = vrot.slane %v1848_v41, 4  ;;  %v1850_v53 = vpop.f32.mrb[3].mxu0  ;;  %v2663_v60 = vpop.f32.mrb[17].mxu1  ;;  %v1943_v18 = vadd.f32 %v4112_v22, %v1919_v44 }
 0x496   : > { %v1934_v4 = vrot.slane %v1850_v53, 4 }
 0x497   : > { %v1926_v14 = vadd.f32 %v1924_v51, %v1728_v1  ;;  %v1945_v21 = vrot.slane %v1943_v18, 4 }
 0x498   : > { %v1936_v26 = vadd.f32 %v1934_v4, %v1729_v17 }
 0x499   : > { %v2338_v31 = vmul.f32 -1.442695, %v1926_v14 }
 0x49a   : > { %v2339_v43 = vmul.f32 -1.442695, %v1936_v26 }
 0x49b   : > { %3430 = vpow2.f32 %v2338_v31 }
 0x49c   : > { %3432 = vpow2.f32 %v2339_v43 }
 0x4a5   : > { %v3431_v47 = vpop.eup %3430 }
 0x4a6   : > { %v3433_v54 = vpop.eup %3432  ;;  %v1930_v58 = vadd.f32 1.0, %v3431_v47 }
 0x4a7   : > { %v1940_v5 = vadd.f32 1.0, %v3433_v54 }
 0x4a8   : > { %3434 = vrcp.f32 %v1930_v58 }
 0x4a9   : > { %3436 = vrcp.f32 %v1940_v5 }
 0x4b2   : > { %v3435_v32 = vpop.eup %3434 }
 0x4b3   : > { %v3437_v56 = vpop.eup %3436  ;;  %v1947_v8 = vmul.f32 %v3435_v32, %v1945_v21 }
 0x4b4   : > { %v1954_v37 = vmul.f32 %v3437_v56, %v1952_v46  ;;  %v1950_v30 = vsub.f32 1.0, %v3437_v56 }
 0x4b5   : > { %v1948_v55 = vadd.f32 %v1947_v8, %v1730_v23 }
 0x4b7   : > { %3438 = vtanh.f32 %v1948_v55 }
 0x4c1   : > { %v3439_v33 = vpop.eup %3438 }
 0x4c2   : > { %v1951_v35 = vmul.f32 %v3439_v33, %v1950_v30 }
 0x4c4   : > { %v1955_v36 = vadd.f32 %v1954_v37, %v1951_v35 }
 0x4c6   : > { %2340 = vst [vmem:[%s3949_s26] sm:$0x30] %v1955_v36  ;;  %v2010_v38 = vrot.slane %v1955_v36, 4  ;;  %v2182_v7 = vrot.slane %v1955_v36, 6 }
 0x4c8   : > { %2077 = vmatmul.mubr.f32.vlgmr.msra.gmra.mrb[4].mxu0 %v2010_v38  ;;  %2697 = vmatmul.mubr.f32.vlgmr.msra.gmra.mrb[18].mxu1 %v2010_v38 }
 0x59b   : > { %v2078_v39 = vpop.f32.mrb[4].mxu0  ;;  %v2149_v42 = vpop.f32.mrb[18].mxu1 }
 0x59c   : > { %v2154_v45 = vrot.slane %v2078_v39, 2  ;;  %v2080_v16 = vpop.f32.mrb[5].mxu0  ;;  %v2698_v29 = vpop.f32.mrb[19].mxu1  ;;  %v2173_v3 = vadd.f32 %v4112_v22, %v2149_v42 }
 0x59d   : > { %v2164_v49 = vrot.slane %v2080_v16, 2 }
 0x59e   : > { %v2156_v27 = vadd.f32 %v2154_v45, %v1958_v48  ;;  %v2175_v6 = vrot.slane %v2173_v3, 2 }
 0x59f   : > { %v2166_v57 = vadd.f32 %v2164_v49, %v1959_v50 }
 0x5a0   : > { %v2341_v52 = vmul.f32 -1.442695, %v2156_v27 }
 0x5a1   : > { %v2342_v59 = vmul.f32 -1.442695, %v2166_v57 }
 0x5a2   : > { %3440 = vpow2.f32 %v2341_v52 }
 0x5a3   : > { %3442 = vpow2.f32 %v2342_v59 }
 0x5ac   : > { %v3441_v61 = vpop.eup %3440 }
 0x5ad   : > { %v3443_v62 = vpop.eup %3442  ;;  %v2160_v63 = vadd.f32 1.0, %v3441_v61 }
 0x5ae   : > { %v2170_v2 = vadd.f32 1.0, %v3443_v62 }
 0x5af   : > { %3444 = vrcp.f32 %v2160_v63 }
 0x5b0   : > { %3446 = vrcp.f32 %v2170_v2 }
 0x5b9   : > { %v3445_v34 = vpop.eup %3444 }
 0x5ba   : > { %v3447_v9 = vpop.eup %3446  ;;  %v2177_v0 = vmul.f32 %v3445_v34, %v2175_v6 }
 0x5bb   : > { %v2184_v12 = vmul.f32 %v3447_v9, %v2182_v7  ;;  %v2180_v13 = vsub.f32 1.0, %v3447_v9 }
 0x5bc   : > { %v2178_v10 = vadd.f32 %v2177_v0, %v1960_v11 }
 0x5be   : > { %3448 = vtanh.f32 %v2178_v10 }
 0x5c8   : > { %v3449_v15 = vpop.eup %3448 }
 0x5c9   : > { %v2181_v19 = vmul.f32 %v3449_v15, %v2180_v13 }
 0x5cb   : > { %v2185_v22 = vadd.f32 %v2184_v12, %v2181_v19 }
 0x5cd   : > { %2188 = vst [vmem:[#allocation2 - $0x6] sm:$0xc0] %v2185_v22  ;;  %2343 = vst [vmem:[%s3949_s26] sm:$0xc0] %v2185_v22 }
 0x5ce   : > { %3605 = shalt.err (!%p3602_p2)
}
 0x5cf   : > { %s3606_s30 = scalar_lea.hbm %s4201_s8, 128  ;;  %s3610_s13 = scalar_lea.hbm %s4253_s5, 256 }
 0x5d0   : > { %p3607_p9 = scmp.ne.s32.totalorder %s4201_s8, %s3606_s30  ;;  %p3611_p11 = scmp.lt.u32.totalorder %s4201_s8, %s4253_s5 }
 0x5d1   : > { %p3612_p1 = scmp.lt.u32.totalorder %s3610_s13, %s3606_s30  ;;  %p3614_p7 = scmp.lt.u32.totalorder %s3606_s30, %s4201_s8 }
 0x5d2   : > { %p3608_p3 = pnand %p3607_p9, %p4272_p8 }
 0x5d3   : > { %p3613_p6 = por %p3612_p1, %p3611_p11 }
 0x5d4   : > { %p3609_p5 = pneg %p3608_p3 }
 0x5d5   : > { %p3615_p10 = por %p3614_p7, %p3613_p6 }
 0x5d7   : > { %p3616_p12 = pnand %p3615_p10, %p3609_p5 }
 0x5d9   : > { %3619 = shalt.err (!%p3616_p12)
}
 0x5da   : > { %s3680_s9 = smov 32   ;;  %s3681_s6 = smov 2  }
 0x5db   : > { %3333 = dma.vmem_to_hbm [thread:$0]  (%p4272_p8), %s4203_s29, 128, %s4201_s8, %s2190_s14, %s3680_s9, %s3680_s9, %s3681_s6  }
 0x5dc PF: > { %s2218_s7 = sand.u32 1, %s3654_s18   ;;  %p4273_p4 = scmp.ne.s32.totalorder %s4264_s12, 0 }
 0x5dd   : > { %p4274_p13 = scmp.ge.s32.totalorder %s3666_s21, 2  ;;  %s2219_s10 = scalar_lea.sflag [#allocation6], %s2218_s7 }
 0x5df   : > { %p3353_p0 = pnand %p4274_p13, %p4273_p4 }
 0x5e1   : > { %3649 = dma.done.wait (!%p3353_p0), %s2219_s10, 128  }
 0x5e2   : > { %3651 = vsyncadd (!%p3353_p0), %s2219_s10, 4294967168  ;;  %p20_p2 = scmp.ge.s32.totalorder %s3854_s28, 4   ;;  %s4275_s18 = smov %s3658_s19 }
 0x5e3   : > { %s4276_s19 = smov %s3662_s20  ;;  %s4277_s20 = smov %s3865_s16 }
 0x5e4   : > { %s4278_s21 = smov %s3854_s28  ;;  %22 = sbr.rel (!%p20_p2) target bundleno = 7 (0x7), region = 108 }
 0x5eb   :  { %2224 = vsyncpa [#allocation5], 1 }
 0x5ec   :  { %2226 = vsyncpa [#allocation5 + $0x1], 1 }
 0x5ed   :  { %2227 = vsyncpa [#allocation8], 1 }
 0x5ee   :  { %2228 = vsyncpa [#allocation11], 1 }
 0x5ef   :  { %2229 = vsyncpa [#allocation6], 1 }
 0x5f0   :  { %2231 = vsyncpa [#allocation6 + $0x1], 1 }

</bundles_post_ra>
